<compile_context>
chip_gen: v6e
topology: v6e:2x2x1
jax: 0.10.0
libtpu: 0.0.40
codegen_flags: <defaults>
</compile_context>

<pallas_src>
import math

import numpy as np
import jax
import jax.numpy as jnp
from jax import lax
from jax.experimental import pallas as pl
from jax.experimental.pallas import tpu as pltpu

# ----------------------- small, module-consistent config -----------------------
B, T = 2, 16          # batch, sequence length
C = 64                # embedding_dim
H = 4                 # num_attention_heads
D = C // H            # head dim
FFN = 128             # ffn_embedding_dim
LAYERS = 2            # num_encoder_layers (small)
VOCAB = 32
PAD_IDX = 0
MAX_SEQ = 32          # max_seq_len
NUM_SEG = 2
RP_BUCKET, MAX_RP = 8, 16
UR_RP_BUCKET, UR_MAX_RP = 8, 16
EPS = 1e-5
NEG = -1e30           # finite "-inf" (wrapper-side only; avoids NaN on all-pad rows)


# ----------------------- relative position buckets (numpy, mirrors torch) ------
def relative_position_bucket_np(rel, num_buckets, max_distance):
    sign = np.sign(rel)
    num_buckets //= 2
    n = np.abs(rel).astype(np.float64)
    max_exact = num_buckets // 2
    is_small = np.abs(rel) < max_exact
    with np.errstate(divide="ignore", invalid="ignore"):
        val_if_large = max_exact + (
            np.log(n / max_exact) / math.log(max_distance / max_exact)
            * (num_buckets - max_exact)
        )
    val_if_large = np.where(np.isfinite(val_if_large), val_if_large, 0.0)
    val_if_large = val_if_large.astype(np.int64)           # trunc toward zero (values >= 0)
    val_if_large = np.minimum(val_if_large, num_buckets - 1)
    ret = np.where(is_small, np.abs(rel), val_if_large) * sign
    return ret.astype(np.int64)


def make_bucket(max_seq, num_buckets, max_distance):
    ctx = np.arange(max_seq, dtype=np.int64)[:, None]
    mem = np.arange(max_seq, dtype=np.int64)[None, :]
    rel = mem - ctx
    b = relative_position_bucket_np(rel, num_buckets, max_distance)
    b[b >= 0] += 2
    b = b - b.min()
    assert b.max() <= num_buckets
    return b.astype(np.int32)


# ----------------------- fused Pallas kernel ------------------------------------
def _layer_norm(x, g, b):
    mu = jnp.mean(x, axis=-1, keepdims=True)
    var = jnp.mean(jnp.square(x - mu), axis=-1, keepdims=True)
    return (x - mu) * lax.rsqrt(var + EPS) * g + b


def fused_encoder_kernel(x_ref, ab_ref, ub_ref,
                         wqkv_ref, bqkv_ref, wo_ref, bo_ref,
                         ln1_g_ref, ln1_b_ref,
                         w1_ref, b1_ref, w2_ref, b2_ref,
                         ln2_g_ref, ln2_b_ref,
                         states_ref):
    # one batch row per program: x (T, C), biases (H, T, T), already mask-applied
    x0 = x_ref[...]                    # (T, C)  f32
    attn_bias = ab_ref[...]            # (H, T, T) f32  (padded keys -> -1e30)
    ur_bias = ub_ref[...]              # (H, T, T) f32  (padded keys -> 0)

    def split_heads(m2d):              # (T, C) f32 -> (H, T, D) f32
        return jnp.transpose(m2d.reshape(T, H, D), (1, 0, 2))

    def layer(li, x):
        xb = x.astype(jnp.bfloat16)
        # fused QKV projection (1/sqrt(D) query scaling folded into W_q at init)
        qkv = jnp.dot(xb, wqkv_ref[li],
                      preferred_element_type=jnp.float32) + bqkv_ref[li]       # (T, 3C) f32
        # split in f32 (robust relayout), cast to bf16 only at the MXU boundary
        q = split_heads(qkv[:, :C]).astype(jnp.bfloat16)                        # (H, T, D)
        k = split_heads(qkv[:, C:2 * C]).astype(jnp.bfloat16)
        v = split_heads(qkv[:, 2 * C:]).astype(jnp.bfloat16)

        # batched over heads: one logits matmul + one PV matmul
        logits = jnp.einsum('hqd,hkd->hqk', q, k,
                            preferred_element_type=jnp.float32) + attn_bias    # (H, T, T)
        m = jnp.max(logits, axis=-1, keepdims=True)
        e = jnp.exp(logits - m)
        denom = jnp.sum(e, axis=-1, keepdims=True)
        probs = e * pl.reciprocal(denom, approx=True)
        probs = probs + ur_bias                                                 # post-softmax bias
        ctx = jnp.einsum('hqk,hkd->hqd', probs.astype(jnp.bfloat16), v,
                         preferred_element_type=jnp.float32)                    # (H, T, D)
        attn = jnp.transpose(ctx, (1, 0, 2)).reshape(T, C)                      # (T, C)

        attn = jnp.dot(attn.astype(jnp.bfloat16), wo_ref[li],
                       preferred_element_type=jnp.float32) + bo_ref[li]
        h1 = _layer_norm(x + attn, ln1_g_ref[li], ln1_b_ref[li])                # post-norm

        ff = jnp.maximum(
            jnp.dot(h1.astype(jnp.bfloat16), w1_ref[li],
                    preferred_element_type=jnp.float32) + b1_ref[li], 0.0)
        ff = jnp.dot(ff.astype(jnp.bfloat16), w2_ref[li],
                     preferred_element_type=jnp.float32) + b2_ref[li]
        x_new = _layer_norm(h1 + ff, ln2_g_ref[li], ln2_b_ref[li])

        states_ref[li] = x_new                                                  # per-layer state
        return x_new

    lax.fori_loop(0, LAYERS, layer, x0)


# ----------------------- parameter init (deterministic, synthetic) --------------
def init_params(key):
    ks = jax.random.split(key, 8 + LAYERS)
    std = 0.02

    def nrm(k, shape):
        return std * jax.random.normal(k, shape, dtype=jnp.float32)

    embed_tokens = nrm(ks[0], (VOCAB, C)).at[PAD_IDX].set(0.0)
    pos_table = nrm(ks[1], (MAX_SEQ + PAD_IDX + 1, C)).at[PAD_IDX].set(0.0)
    seg_table = nrm(ks[2], (NUM_SEG, C))
    rp_bias = nrm(ks[3], (RP_BUCKET + 1, H))
    ur_rp_bias = nrm(ks[4], (UR_RP_BUCKET + 1, H))

    scaling = D ** -0.5
    wqkv, bqkv, wo, bo = [], [], [], []
    ln1_g, ln1_b, w1, b1, w2, b2, ln2_g, ln2_b = ([] for _ in range(8))
    for li in range(LAYERS):
        lk = jax.random.split(ks[8 + li], 6)
        wq = nrm(lk[0], (C, C)) * scaling      # fold 1/sqrt(D) query scaling into W_q
        wk = nrm(lk[1], (C, C))
        wv = nrm(lk[2], (C, C))
        wqkv.append(jnp.concatenate([wq, wk, wv], axis=1))            # (C, 3C)
        bqkv.append(jnp.zeros((1, 3 * C), jnp.float32))               # biases zero (BERT init)
        wo.append(nrm(lk[3], (C, C)))
        bo.append(jnp.zeros((1, C), jnp.float32))
        ln1_g.append(jnp.ones((1, C), jnp.float32))
        ln1_b.append(jnp.zeros((1, C), jnp.float32))
        w1.append(nrm(lk[4], (C, FFN)))
        b1.append(jnp.zeros((1, FFN), jnp.float32))
        w2.append(nrm(lk[5], (FFN, C)))
        b2.append(jnp.zeros((1, C), jnp.float32))
        ln2_g.append(jnp.ones((1, C), jnp.float32))
        ln2_b.append(jnp.zeros((1, C), jnp.float32))

    stack = lambda xs: jnp.stack(xs, axis=0)
    return dict(
        embed_tokens=embed_tokens, pos_table=pos_table, seg_table=seg_table,
        rp_bias=rp_bias, ur_rp_bias=ur_rp_bias,
        bucket=jnp.asarray(make_bucket(MAX_SEQ, RP_BUCKET, MAX_RP)),
        ur_bucket=jnp.asarray(make_bucket(MAX_SEQ, UR_RP_BUCKET, UR_MAX_RP)),
        # MXU operands in bf16 (f32 accumulation in-kernel); everything else f32.
        wqkv=stack(wqkv).astype(jnp.bfloat16), bqkv=stack(bqkv),
        wo=stack(wo).astype(jnp.bfloat16), bo=stack(bo),
        ln1_g=stack(ln1_g), ln1_b=stack(ln1_b),
        w1=stack(w1).astype(jnp.bfloat16), b1=stack(b1),
        w2=stack(w2).astype(jnp.bfloat16), b2=stack(b2),
        ln2_g=stack(ln2_g), ln2_b=stack(ln2_b),
    )


# ----------------------- forward (glue + one fused Pallas call) ------------------
def forward(params, tokens, segment_labels):
    padding_mask = (tokens == PAD_IDX)                               # (B, T) bool

    # embedding combine (gathers + trivial elementwise stay in XLA)
    tok_emb = jnp.take(params["embed_tokens"], tokens, axis=0)       # (B, T, C)
    mask_i = (tokens != PAD_IDX).astype(jnp.int32)
    positions = jnp.cumsum(mask_i, axis=1) * mask_i + PAD_IDX        # fairseq make_positions
    pos_emb = jnp.take(params["pos_table"], positions, axis=0)
    seg_emb = jnp.take(params["seg_table"], segment_labels, axis=0)
    keep = 1.0 - padding_mask.astype(jnp.float32)[..., None]         # (B, T, 1)
    x0 = (tok_emb + pos_emb + seg_emb) * keep                        # (B, T, C) f32

    # pre-masked relative-position bias tables (tiny; computed once in the wrapper)
    bucket = params["bucket"][:T, :T]
    rp = jnp.transpose(jnp.take(params["rp_bias"], bucket, axis=0), (2, 0, 1))       # (H,T,T)
    ur_bucket = params["ur_bucket"][:T, :T]
    ur = jnp.transpose(jnp.take(params["ur_rp_bias"], ur_bucket, axis=0), (2, 0, 1))
    key_pad = padding_mask[:, None, None, :]                         # (B,1,1,T)
    attn_bias = jnp.where(key_pad, NEG, rp[None])                    # (B,H,T,T) pre-softmax
    ur_bias = jnp.where(key_pad, 0.0, ur[None])                      # (B,H,T,T) post-softmax

    wspec = lambda shape: pl.BlockSpec(shape, lambda b, s=len(shape): (0,) * s)

    # single fused kernel: all encoder layers, one batch row per grid program
    # (output last dims stay (T, C=64); lane-dense stores become automatic at real C>=128)
    states = pl.pallas_call(
        fused_encoder_kernel,
        out_shape=jax.ShapeDtypeStruct((LAYERS, B, T, C), jnp.float32),
        grid=(B,),
        in_specs=[
            pl.BlockSpec((None, T, C), lambda b: (b, 0, 0)),          # x0
            pl.BlockSpec((None, H, T, T), lambda b: (b, 0, 0, 0)),    # attn_bias
            pl.BlockSpec((None, H, T, T), lambda b: (b, 0, 0, 0)),    # ur_bias
            wspec((LAYERS, C, 3 * C)),                                # wqkv
            wspec((LAYERS, 1, 3 * C)),                                # bqkv
            wspec((LAYERS, C, C)),                                    # wo
            wspec((LAYERS, 1, C)),                                    # bo
            wspec((LAYERS, 1, C)),                                    # ln1_g
            wspec((LAYERS, 1, C)),                                    # ln1_b
            wspec((LAYERS, C, FFN)),                                  # w1
            wspec((LAYERS, 1, FFN)),                                  # b1
            wspec((LAYERS, FFN, C)),                                  # w2
            wspec((LAYERS, 1, C)),                                    # b2
            wspec((LAYERS, 1, C)),                                    # ln2_g
            wspec((LAYERS, 1, C)),                                    # ln2_b
        ],
        out_specs=pl.BlockSpec((LAYERS, None, T, C), lambda b: (0, b, 0, 0)),
        compiler_params=pltpu.CompilerParams(
            dimension_semantics=("parallel",),
            vmem_limit_bytes=32 * 1024 * 1024,
        ),
    )(x0, attn_bias, ur_bias,
      params["wqkv"], params["bqkv"], params["wo"], params["bo"],
      params["ln1_g"], params["ln1_b"],
      params["w1"], params["b1"], params["w2"], params["b2"],
      params["ln2_g"], params["ln2_b"])

    # tiny layout glue: T x B x C inner_states and B x C sentence_rep
    inner_states = [jnp.transpose(x0, (1, 0, 2))]
    inner_states += [jnp.transpose(states[i], (1, 0, 2)) for i in range(LAYERS)]
    sentence_rep = states[-1][:, 0, :]                               # first token (CLS)
    return inner_states, sentence_rep


# ----------------------- main ----------------------------------------------------
if __name__ == "__main__":
    root = jax.random.PRNGKey(0)
    k_param, k_tok, k_seg = jax.random.split(root, 3)

    params = init_params(k_param)

    tokens = jax.random.randint(k_tok, (B, T), 2, VOCAB, dtype=jnp.int32)
    tokens = tokens.at[1, T - 4:].set(PAD_IDX)                       # some padding
    segment_labels = jax.random.randint(k_seg, (B, T), 0, NUM_SEG, dtype=jnp.int32)

    inner_states, sentence_rep = forward(params, tokens, segment_labels)
    jax.block_until_ready(sentence_rep)
    for s in inner_states:
        jax.block_until_ready(s)

    assert sentence_rep.shape == (B, C)
    assert all(s.shape == (T, B, C) for s in inner_states)
    assert len(inner_states) == LAYERS + 1
    assert bool(jnp.all(jnp.isfinite(sentence_rep)))
    assert bool(jnp.all(jnp.isfinite(inner_states[-1])))
    print("KERNEL_OK")
</pallas_src>

<mosaic_0001>
module attributes {stable_mosaic.version = 11 : i64} {
  func.func @fused_encoder_kernel(%arg0: i32, %arg1: memref<1x16x64xf32, #tpu.memory_space<vmem>>, %arg2: memref<1x4x16x16xf32, #tpu.memory_space<vmem>>, %arg3: memref<1x4x16x16xf32, #tpu.memory_space<vmem>>, %arg4: memref<2x64x192xbf16, #tpu.memory_space<vmem>>, %arg5: memref<2x1x192xf32, #tpu.memory_space<vmem>>, %arg6: memref<2x64x64xbf16, #tpu.memory_space<vmem>>, %arg7: memref<2x1x64xf32, #tpu.memory_space<vmem>>, %arg8: memref<2x1x64xf32, #tpu.memory_space<vmem>>, %arg9: memref<2x1x64xf32, #tpu.memory_space<vmem>>, %arg10: memref<2x64x128xbf16, #tpu.memory_space<vmem>>, %arg11: memref<2x1x128xf32, #tpu.memory_space<vmem>>, %arg12: memref<2x128x64xbf16, #tpu.memory_space<vmem>>, %arg13: memref<2x1x64xf32, #tpu.memory_space<vmem>>, %arg14: memref<2x1x64xf32, #tpu.memory_space<vmem>>, %arg15: memref<2x1x64xf32, #tpu.memory_space<vmem>>, %arg16: memref<2x1x16x64xf32, #tpu.memory_space<vmem>>) attributes {dimension_semantics = [#tpu.dimension_semantics<parallel>], iteration_bounds = array<i64: 2>, scalar_prefetch = 0 : i64, scratch_operands = 0 : i64, tpu.core_type = #tpu.core_type<tc>, window_params = [{transform_indices = @transform_0, window_bounds = array<i64: 1, 16, 64>}, {transform_indices = @transform_1, window_bounds = array<i64: 1, 4, 16, 16>}, {transform_indices = @transform_2, window_bounds = array<i64: 1, 4, 16, 16>}, {pipeline_mode = #tpu.pipeline_mode<synchronous>, transform_indices = @transform_3, window_bounds = array<i64: 2, 64, 192>}, {pipeline_mode = #tpu.pipeline_mode<synchronous>, transform_indices = @transform_4, window_bounds = array<i64: 2, 1, 192>}, {pipeline_mode = #tpu.pipeline_mode<synchronous>, transform_indices = @transform_5, window_bounds = array<i64: 2, 64, 64>}, {pipeline_mode = #tpu.pipeline_mode<synchronous>, transform_indices = @transform_6, window_bounds = array<i64: 2, 1, 64>}, {pipeline_mode = #tpu.pipeline_mode<synchronous>, transform_indices = @transform_7, window_bounds = array<i64: 2, 1, 64>}, {pipeline_mode = #tpu.pipeline_mode<synchronous>, transform_indices = @transform_8, window_bounds = array<i64: 2, 1, 64>}, {pipeline_mode = #tpu.pipeline_mode<synchronous>, transform_indices = @transform_9, window_bounds = array<i64: 2, 64, 128>}, {pipeline_mode = #tpu.pipeline_mode<synchronous>, transform_indices = @transform_10, window_bounds = array<i64: 2, 1, 128>}, {pipeline_mode = #tpu.pipeline_mode<synchronous>, transform_indices = @transform_11, window_bounds = array<i64: 2, 128, 64>}, {pipeline_mode = #tpu.pipeline_mode<synchronous>, transform_indices = @transform_12, window_bounds = array<i64: 2, 1, 64>}, {pipeline_mode = #tpu.pipeline_mode<synchronous>, transform_indices = @transform_13, window_bounds = array<i64: 2, 1, 64>}, {pipeline_mode = #tpu.pipeline_mode<synchronous>, transform_indices = @transform_14, window_bounds = array<i64: 2, 1, 64>}, {transform_indices = @transform_15, window_bounds = array<i64: 2, 1, 16, 64>}]} {
    %c0 = arith.constant 0 : index
    %c0_0 = arith.constant 0 : index
    %c0_1 = arith.constant 0 : index
    %0 = vector.load %arg1[%c0, %c0_0, %c0_1] : memref<1x16x64xf32, #tpu.memory_space<vmem>>, vector<1x16x64xf32>
    %1 = vector.shape_cast %0 : vector<1x16x64xf32> to vector<16x64xf32>
    %c0_2 = arith.constant 0 : index
    %c0_3 = arith.constant 0 : index
    %c0_4 = arith.constant 0 : index
    %c0_5 = arith.constant 0 : index
    %2 = vector.load %arg2[%c0_2, %c0_3, %c0_4, %c0_5] : memref<1x4x16x16xf32, #tpu.memory_space<vmem>>, vector<1x4x16x16xf32>
    %3 = vector.shape_cast %2 : vector<1x4x16x16xf32> to vector<4x16x16xf32>
    %c0_6 = arith.constant 0 : index
    %c0_7 = arith.constant 0 : index
    %c0_8 = arith.constant 0 : index
    %c0_9 = arith.constant 0 : index
    %4 = vector.load %arg3[%c0_6, %c0_7, %c0_8, %c0_9] : memref<1x4x16x16xf32, #tpu.memory_space<vmem>>, vector<1x4x16x16xf32>
    %5 = vector.shape_cast %4 : vector<1x4x16x16xf32> to vector<4x16x16xf32>
    %c0_i32 = arith.constant 0 : i32
    %c2_i32 = arith.constant 2 : i32
    %6 = arith.addi %c0_i32, %c2_i32 : i32
    %c1_i32 = arith.constant 1 : i32
    %7 = scf.for %arg17 = %c0_i32 to %6 step %c1_i32 iter_args(%arg18 = %1) -> (vector<16x64xf32>)  : i32 {
      %8 = arith.truncf %arg18 : vector<16x64xf32> to vector<16x64xbf16>
      %9 = arith.index_cast %arg17 : i32 to index
      %c0_11 = arith.constant 0 : index
      %c0_12 = arith.constant 0 : index
      %10 = vector.load %arg4[%9, %c0_11, %c0_12] : memref<2x64x192xbf16, #tpu.memory_space<vmem>>, vector<1x64x192xbf16>
      %11 = vector.shape_cast %10 : vector<1x64x192xbf16> to vector<64x192xbf16>
      %cst = arith.constant dense<0.000000e+00> : vector<16x192xf32>
      %12 = tpu.matmul %8, %11, %cst {dimension_numbers = #tpu.dot_dimension_numbers<[1], [0], [0], [1], [0, 0, 1, 1], [], []>} : vector<16x64xbf16>, vector<64x192xbf16>, vector<16x192xf32> -> vector<16x192xf32>
      %13 = arith.index_cast %arg17 : i32 to index
      %c0_13 = arith.constant 0 : index
      %c0_14 = arith.constant 0 : index
      %14 = vector.load %arg5[%13, %c0_13, %c0_14] : memref<2x1x192xf32, #tpu.memory_space<vmem>>, vector<1x1x192xf32>
      %15 = vector.shape_cast %14 : vector<1x1x192xf32> to vector<1x192xf32>
      %16 = vector.broadcast %15 : vector<1x192xf32> to vector<16x192xf32>
      %17 = arith.addf %12, %16 : vector<16x192xf32>
      %18 = vector.extract_strided_slice %17 {offsets = [0, 0], sizes = [16, 64], strides = [1, 1]} : vector<16x192xf32> to vector<16x64xf32>
      %19 = vector.shape_cast %18 : vector<16x64xf32> to vector<16x4x16xf32>
      %20 = tpu.transpose %19, [1, 0, 2] : vector<16x4x16xf32> -> vector<4x16x16xf32>
      %21 = arith.truncf %20 : vector<4x16x16xf32> to vector<4x16x16xbf16>
      %22 = vector.extract_strided_slice %17 {offsets = [0, 64], sizes = [16, 64], strides = [1, 1]} : vector<16x192xf32> to vector<16x64xf32>
      %23 = vector.shape_cast %22 : vector<16x64xf32> to vector<16x4x16xf32>
      %24 = tpu.transpose %23, [1, 0, 2] : vector<16x4x16xf32> -> vector<4x16x16xf32>
      %25 = arith.truncf %24 : vector<4x16x16xf32> to vector<4x16x16xbf16>
      %26 = vector.extract_strided_slice %17 {offsets = [0, 128], sizes = [16, 64], strides = [1, 1]} : vector<16x192xf32> to vector<16x64xf32>
      %27 = vector.shape_cast %26 : vector<16x64xf32> to vector<16x4x16xf32>
      %28 = tpu.transpose %27, [1, 0, 2] : vector<16x4x16xf32> -> vector<4x16x16xf32>
      %29 = arith.truncf %28 : vector<4x16x16xf32> to vector<4x16x16xbf16>
      "tpu.trace_start"() <{level = 10 : i32, message = "hqd,hkd->hqk"}> : () -> ()
      %cst_15 = arith.constant dense<0.000000e+00> : vector<4x16x16xf32>
      %30 = tpu.matmul %21, %25, %cst_15 {dimension_numbers = #tpu.dot_dimension_numbers<[2], [2], [1], [1], [0, 0, 0, 1, 1, 1], [0], [0]>} : vector<4x16x16xbf16>, vector<4x16x16xbf16>, vector<4x16x16xf32> -> vector<4x16x16xf32>
      "tpu.trace_stop"() : () -> ()
      %31 = arith.addf %30, %3 : vector<4x16x16xf32>
      %cst_16 = arith.constant dense<0xFF800000> : vector<4x16xf32>
      %32 = vector.multi_reduction <maximumf>, %31, %cst_16 [2] : vector<4x16x16xf32> to vector<4x16xf32>
      %33 = vector.shape_cast %32 : vector<4x16xf32> to vector<4x16x1xf32>
      %34 = vector.broadcast %33 : vector<4x16x1xf32> to vector<4x16x16xf32>
      %35 = arith.subf %31, %34 : vector<4x16x16xf32>
      %36 = math.exp %35 : vector<4x16x16xf32>
      %cst_17 = arith.constant dense<0.000000e+00> : vector<4x16xf32>
      %37 = vector.multi_reduction <add>, %36, %cst_17 [2] : vector<4x16x16xf32> to vector<4x16xf32>
      %38 = vector.shape_cast %37 : vector<4x16xf32> to vector<4x16x1xf32>
      %39 = tpu.reciprocal %38 {approx = true} : vector<4x16x1xf32> -> vector<4x16x1xf32>
      %40 = vector.broadcast %39 : vector<4x16x1xf32> to vector<4x16x16xf32>
      %41 = arith.mulf %36, %40 : vector<4x16x16xf32>
      %42 = arith.addf %41, %5 : vector<4x16x16xf32>
      %43 = arith.truncf %42 : vector<4x16x16xf32> to vector<4x16x16xbf16>
      "tpu.trace_start"() <{level = 10 : i32, message = "hqk,hkd->hqd"}> : () -> ()
      %cst_18 = arith.constant dense<0.000000e+00> : vector<4x16x16xf32>
      %44 = tpu.matmul %43, %29, %cst_18 {dimension_numbers = #tpu.dot_dimension_numbers<[2], [1], [1], [2], [0, 0, 0, 1, 1, 2], [0], [0]>} : vector<4x16x16xbf16>, vector<4x16x16xbf16>, vector<4x16x16xf32> -> vector<4x16x16xf32>
      "tpu.trace_stop"() : () -> ()
      %45 = tpu.transpose %44, [1, 0, 2] : vector<4x16x16xf32> -> vector<16x4x16xf32>
      %46 = vector.shape_cast %45 : vector<16x4x16xf32> to vector<16x64xf32>
      %47 = arith.truncf %46 : vector<16x64xf32> to vector<16x64xbf16>
      %48 = arith.index_cast %arg17 : i32 to index
      %c0_19 = arith.constant 0 : index
      %c0_20 = arith.constant 0 : index
      %49 = vector.load %arg6[%48, %c0_19, %c0_20] : memref<2x64x64xbf16, #tpu.memory_space<vmem>>, vector<1x64x64xbf16>
      %50 = vector.shape_cast %49 : vector<1x64x64xbf16> to vector<64x64xbf16>
      %cst_21 = arith.constant dense<0.000000e+00> : vector<16x64xf32>
      %51 = tpu.matmul %47, %50, %cst_21 {dimension_numbers = #tpu.dot_dimension_numbers<[1], [0], [0], [1], [0, 0, 1, 1], [], []>} : vector<16x64xbf16>, vector<64x64xbf16>, vector<16x64xf32> -> vector<16x64xf32>
      %52 = arith.index_cast %arg17 : i32 to index
      %c0_22 = arith.constant 0 : index
      %c0_23 = arith.constant 0 : index
      %53 = vector.load %arg7[%52, %c0_22, %c0_23] : memref<2x1x64xf32, #tpu.memory_space<vmem>>, vector<1x1x64xf32>
      %54 = vector.shape_cast %53 : vector<1x1x64xf32> to vector<1x64xf32>
      %55 = vector.broadcast %54 : vector<1x64xf32> to vector<16x64xf32>
      %56 = arith.addf %51, %55 : vector<16x64xf32>
      %57 = arith.addf %arg18, %56 : vector<16x64xf32>
      %58 = arith.index_cast %arg17 : i32 to index
      %c0_24 = arith.constant 0 : index
      %c0_25 = arith.constant 0 : index
      %59 = vector.load %arg8[%58, %c0_24, %c0_25] : memref<2x1x64xf32, #tpu.memory_space<vmem>>, vector<1x1x64xf32>
      %60 = vector.shape_cast %59 : vector<1x1x64xf32> to vector<1x64xf32>
      %61 = arith.index_cast %arg17 : i32 to index
      %c0_26 = arith.constant 0 : index
      %c0_27 = arith.constant 0 : index
      %62 = vector.load %arg9[%61, %c0_26, %c0_27] : memref<2x1x64xf32, #tpu.memory_space<vmem>>, vector<1x1x64xf32>
      %63 = vector.shape_cast %62 : vector<1x1x64xf32> to vector<1x64xf32>
      %cst_28 = arith.constant dense<0.000000e+00> : vector<16xf32>
      %64 = vector.multi_reduction <add>, %57, %cst_28 [1] : vector<16x64xf32> to vector<16xf32>
      %65 = vector.shape_cast %64 : vector<16xf32> to vector<16x1xf32>
      %cst_29 = arith.constant 6.400000e+01 : f32
      %66 = vector.broadcast %cst_29 : f32 to vector<16x1xf32>
      %67 = arith.divf %65, %66 : vector<16x1xf32>
      %68 = vector.broadcast %67 : vector<16x1xf32> to vector<16x64xf32>
      %69 = arith.subf %57, %68 : vector<16x64xf32>
      %70 = arith.mulf %69, %69 : vector<16x64xf32>
      %cst_30 = arith.constant dense<0.000000e+00> : vector<16xf32>
      %71 = vector.multi_reduction <add>, %70, %cst_30 [1] : vector<16x64xf32> to vector<16xf32>
      %72 = vector.shape_cast %71 : vector<16xf32> to vector<16x1xf32>
      %cst_31 = arith.constant 6.400000e+01 : f32
      %73 = vector.broadcast %cst_31 : f32 to vector<16x1xf32>
      %74 = arith.divf %72, %73 : vector<16x1xf32>
      %75 = vector.broadcast %67 : vector<16x1xf32> to vector<16x64xf32>
      %76 = arith.subf %57, %75 : vector<16x64xf32>
      %cst_32 = arith.constant 9.99999974E-6 : f32
      %77 = vector.broadcast %cst_32 : f32 to vector<16x1xf32>
      %78 = arith.addf %74, %77 : vector<16x1xf32>
      %79 = math.rsqrt %78 : vector<16x1xf32>
      %80 = vector.broadcast %79 : vector<16x1xf32> to vector<16x64xf32>
      %81 = arith.mulf %76, %80 : vector<16x64xf32>
      %82 = vector.broadcast %60 : vector<1x64xf32> to vector<16x64xf32>
      %83 = arith.mulf %81, %82 : vector<16x64xf32>
      %84 = vector.broadcast %63 : vector<1x64xf32> to vector<16x64xf32>
      %85 = arith.addf %83, %84 : vector<16x64xf32>
      %86 = arith.truncf %85 : vector<16x64xf32> to vector<16x64xbf16>
      %87 = arith.index_cast %arg17 : i32 to index
      %c0_33 = arith.constant 0 : index
      %c0_34 = arith.constant 0 : index
      %88 = vector.load %arg10[%87, %c0_33, %c0_34] : memref<2x64x128xbf16, #tpu.memory_space<vmem>>, vector<1x64x128xbf16>
      %89 = vector.shape_cast %88 : vector<1x64x128xbf16> to vector<64x128xbf16>
      %cst_35 = arith.constant dense<0.000000e+00> : vector<16x128xf32>
      %90 = tpu.matmul %86, %89, %cst_35 {dimension_numbers = #tpu.dot_dimension_numbers<[1], [0], [0], [1], [0, 0, 1, 1], [], []>} : vector<16x64xbf16>, vector<64x128xbf16>, vector<16x128xf32> -> vector<16x128xf32>
      %91 = arith.index_cast %arg17 : i32 to index
      %c0_36 = arith.constant 0 : index
      %c0_37 = arith.constant 0 : index
      %92 = vector.load %arg11[%91, %c0_36, %c0_37] : memref<2x1x128xf32, #tpu.memory_space<vmem>>, vector<1x1x128xf32>
      %93 = vector.shape_cast %92 : vector<1x1x128xf32> to vector<1x128xf32>
      %94 = vector.broadcast %93 : vector<1x128xf32> to vector<16x128xf32>
      %95 = arith.addf %90, %94 : vector<16x128xf32>
      %cst_38 = arith.constant 0.000000e+00 : f32
      %96 = vector.broadcast %cst_38 : f32 to vector<16x128xf32>
      %97 = arith.maximumf %95, %96 : vector<16x128xf32>
      %98 = arith.truncf %97 : vector<16x128xf32> to vector<16x128xbf16>
      %99 = arith.index_cast %arg17 : i32 to index
      %c0_39 = arith.constant 0 : index
      %c0_40 = arith.constant 0 : index
      %100 = vector.load %arg12[%99, %c0_39, %c0_40] : memref<2x128x64xbf16, #tpu.memory_space<vmem>>, vector<1x128x64xbf16>
      %101 = vector.shape_cast %100 : vector<1x128x64xbf16> to vector<128x64xbf16>
      %cst_41 = arith.constant dense<0.000000e+00> : vector<16x64xf32>
      %102 = tpu.matmul %98, %101, %cst_41 {dimension_numbers = #tpu.dot_dimension_numbers<[1], [0], [0], [1], [0, 0, 1, 1], [], []>} : vector<16x128xbf16>, vector<128x64xbf16>, vector<16x64xf32> -> vector<16x64xf32>
      %103 = arith.index_cast %arg17 : i32 to index
      %c0_42 = arith.constant 0 : index
      %c0_43 = arith.constant 0 : index
      %104 = vector.load %arg13[%103, %c0_42, %c0_43] : memref<2x1x64xf32, #tpu.memory_space<vmem>>, vector<1x1x64xf32>
      %105 = vector.shape_cast %104 : vector<1x1x64xf32> to vector<1x64xf32>
      %106 = vector.broadcast %105 : vector<1x64xf32> to vector<16x64xf32>
      %107 = arith.addf %102, %106 : vector<16x64xf32>
      %108 = arith.addf %85, %107 : vector<16x64xf32>
      %109 = arith.index_cast %arg17 : i32 to index
      %c0_44 = arith.constant 0 : index
      %c0_45 = arith.constant 0 : index
      %110 = vector.load %arg14[%109, %c0_44, %c0_45] : memref<2x1x64xf32, #tpu.memory_space<vmem>>, vector<1x1x64xf32>
      %111 = vector.shape_cast %110 : vector<1x1x64xf32> to vector<1x64xf32>
      %112 = arith.index_cast %arg17 : i32 to index
      %c0_46 = arith.constant 0 : index
      %c0_47 = arith.constant 0 : index
      %113 = vector.load %arg15[%112, %c0_46, %c0_47] : memref<2x1x64xf32, #tpu.memory_space<vmem>>, vector<1x1x64xf32>
      %114 = vector.shape_cast %113 : vector<1x1x64xf32> to vector<1x64xf32>
      %cst_48 = arith.constant dense<0.000000e+00> : vector<16xf32>
      %115 = vector.multi_reduction <add>, %108, %cst_48 [1] : vector<16x64xf32> to vector<16xf32>
      %116 = vector.shape_cast %115 : vector<16xf32> to vector<16x1xf32>
      %cst_49 = arith.constant 6.400000e+01 : f32
      %117 = vector.broadcast %cst_49 : f32 to vector<16x1xf32>
      %118 = arith.divf %116, %117 : vector<16x1xf32>
      %119 = vector.broadcast %118 : vector<16x1xf32> to vector<16x64xf32>
      %120 = arith.subf %108, %119 : vector<16x64xf32>
      %121 = arith.mulf %120, %120 : vector<16x64xf32>
      %cst_50 = arith.constant dense<0.000000e+00> : vector<16xf32>
      %122 = vector.multi_reduction <add>, %121, %cst_50 [1] : vector<16x64xf32> to vector<16xf32>
      %123 = vector.shape_cast %122 : vector<16xf32> to vector<16x1xf32>
      %cst_51 = arith.constant 6.400000e+01 : f32
      %124 = vector.broadcast %cst_51 : f32 to vector<16x1xf32>
      %125 = arith.divf %123, %124 : vector<16x1xf32>
      %126 = vector.broadcast %118 : vector<16x1xf32> to vector<16x64xf32>
      %127 = arith.subf %108, %126 : vector<16x64xf32>
      %cst_52 = arith.constant 9.99999974E-6 : f32
      %128 = vector.broadcast %cst_52 : f32 to vector<16x1xf32>
      %129 = arith.addf %125, %128 : vector<16x1xf32>
      %130 = math.rsqrt %129 : vector<16x1xf32>
      %131 = vector.broadcast %130 : vector<16x1xf32> to vector<16x64xf32>
      %132 = arith.mulf %127, %131 : vector<16x64xf32>
      %133 = vector.broadcast %111 : vector<1x64xf32> to vector<16x64xf32>
      %134 = arith.mulf %132, %133 : vector<16x64xf32>
      %135 = vector.broadcast %114 : vector<1x64xf32> to vector<16x64xf32>
      %136 = arith.addf %134, %135 : vector<16x64xf32>
      %137 = arith.index_cast %arg17 : i32 to index
      %c0_53 = arith.constant 0 : index
      %c0_54 = arith.constant 0 : index
      %c0_55 = arith.constant 0 : index
      %138 = vector.load %arg16[%137, %c0_53, %c0_54, %c0_55] : memref<2x1x16x64xf32, #tpu.memory_space<vmem>>, vector<1x1x16x64xf32>
      %139 = vector.shape_cast %138 : vector<1x1x16x64xf32> to vector<16x64xf32>
      %140 = vector.shape_cast %136 : vector<16x64xf32> to vector<1x1x16x64xf32>
      tpu.vector_store %arg16[%137, %c0_53, %c0_54, %c0_55], %140 {strides = array<i32>} : memref<2x1x16x64xf32, #tpu.memory_space<vmem>>, vector<1x1x16x64xf32>,
      scf.yield %136 : vector<16x64xf32>
    }
    %c2_i32_10 = arith.constant 2 : i32
    return
  }
  func.func @transform_0(%arg0: i32) -> (i32, i32, i32) {
    %c0_i32 = arith.constant 0 : i32
    %c0_i32_0 = arith.constant 0 : i32
    %c0_i32_1 = arith.constant 0 : i32
    return %arg0, %c0_i32, %c0_i32_0 : i32, i32, i32
  }
  func.func @transform_1(%arg0: i32) -> (i32, i32, i32, i32) {
    %c0_i32 = arith.constant 0 : i32
    %c0_i32_0 = arith.constant 0 : i32
    %c0_i32_1 = arith.constant 0 : i32
    %c0_i32_2 = arith.constant 0 : i32
    return %arg0, %c0_i32, %c0_i32_0, %c0_i32_1 : i32, i32, i32, i32
  }
  func.func @transform_2(%arg0: i32) -> (i32, i32, i32, i32) {
    %c0_i32 = arith.constant 0 : i32
    %c0_i32_0 = arith.constant 0 : i32
    %c0_i32_1 = arith.constant 0 : i32
    %c0_i32_2 = arith.constant 0 : i32
    return %arg0, %c0_i32, %c0_i32_0, %c0_i32_1 : i32, i32, i32, i32
  }
  func.func @transform_3(%arg0: i32) -> (i32, i32, i32) {
    %c0_i32 = arith.constant 0 : i32
    %c0_i32_0 = arith.constant 0 : i32
    %c0_i32_1 = arith.constant 0 : i32
    %c0_i32_2 = arith.constant 0 : i32
    return %c0_i32, %c0_i32_0, %c0_i32_1 : i32, i32, i32
  }
  func.func @transform_4(%arg0: i32) -> (i32, i32, i32) {
    %c0_i32 = arith.constant 0 : i32
    %c0_i32_0 = arith.constant 0 : i32
    %c0_i32_1 = arith.constant 0 : i32
    %c0_i32_2 = arith.constant 0 : i32
    return %c0_i32, %c0_i32_0, %c0_i32_1 : i32, i32, i32
  }
  func.func @transform_5(%arg0: i32) -> (i32, i32, i32) {
    %c0_i32 = arith.constant 0 : i32
    %c0_i32_0 = arith.constant 0 : i32
    %c0_i32_1 = arith.constant 0 : i32
    %c0_i32_2 = arith.constant 0 : i32
    return %c0_i32, %c0_i32_0, %c0_i32_1 : i32, i32, i32
  }
  func.func @transform_6(%arg0: i32) -> (i32, i32, i32) {
    %c0_i32 = arith.constant 0 : i32
    %c0_i32_0 = arith.constant 0 : i32
    %c0_i32_1 = arith.constant 0 : i32
    %c0_i32_2 = arith.constant 0 : i32
    return %c0_i32, %c0_i32_0, %c0_i32_1 : i32, i32, i32
  }
  func.func @transform_7(%arg0: i32) -> (i32, i32, i32) {
    %c0_i32 = arith.constant 0 : i32
    %c0_i32_0 = arith.constant 0 : i32
    %c0_i32_1 = arith.constant 0 : i32
    %c0_i32_2 = arith.constant 0 : i32
    return %c0_i32, %c0_i32_0, %c0_i32_1 : i32, i32, i32
  }
  func.func @transform_8(%arg0: i32) -> (i32, i32, i32) {
    %c0_i32 = arith.constant 0 : i32
    %c0_i32_0 = arith.constant 0 : i32
    %c0_i32_1 = arith.constant 0 : i32
    %c0_i32_2 = arith.constant 0 : i32
    return %c0_i32, %c0_i32_0, %c0_i32_1 : i32, i32, i32
  }
  func.func @transform_9(%arg0: i32) -> (i32, i32, i32) {
    %c0_i32 = arith.constant 0 : i32
    %c0_i32_0 = arith.constant 0 : i32
    %c0_i32_1 = arith.constant 0 : i32
    %c0_i32_2 = arith.constant 0 : i32
    return %c0_i32, %c0_i32_0, %c0_i32_1 : i32, i32, i32
  }
  func.func @transform_10(%arg0: i32) -> (i32, i32, i32) {
    %c0_i32 = arith.constant 0 : i32
    %c0_i32_0 = arith.constant 0 : i32
    %c0_i32_1 = arith.constant 0 : i32
    %c0_i32_2 = arith.constant 0 : i32
    return %c0_i32, %c0_i32_0, %c0_i32_1 : i32, i32, i32
  }
  func.func @transform_11(%arg0: i32) -> (i32, i32, i32) {
    %c0_i32 = arith.constant 0 : i32
    %c0_i32_0 = arith.constant 0 : i32
    %c0_i32_1 = arith.constant 0 : i32
    %c0_i32_2 = arith.constant 0 : i32
    return %c0_i32, %c0_i32_0, %c0_i32_1 : i32, i32, i32
  }
  func.func @transform_12(%arg0: i32) -> (i32, i32, i32) {
    %c0_i32 = arith.constant 0 : i32
    %c0_i32_0 = arith.constant 0 : i32
    %c0_i32_1 = arith.constant 0 : i32
    %c0_i32_2 = arith.constant 0 : i32
    return %c0_i32, %c0_i32_0, %c0_i32_1 : i32, i32, i32
  }
  func.func @transform_13(%arg0: i32) -> (i32, i32, i32) {
    %c0_i32 = arith.constant 0 : i32
    %c0_i32_0 = arith.constant 0 : i32
    %c0_i32_1 = arith.constant 0 : i32
    %c0_i32_2 = arith.constant 0 : i32
    return %c0_i32, %c0_i32_0, %c0_i32_1 : i32, i32, i32
  }
  func.func @transform_14(%arg0: i32) -> (i32, i32, i32) {
    %c0_i32 = arith.constant 0 : i32
    %c0_i32_0 = arith.constant 0 : i32
    %c0_i32_1 = arith.constant 0 : i32
    %c0_i32_2 = arith.constant 0 : i32
    return %c0_i32, %c0_i32_0, %c0_i32_1 : i32, i32, i32
  }
  func.func @transform_15(%arg0: i32) -> (i32, i32, i32, i32) {
    %c0_i32 = arith.constant 0 : i32
    %c0_i32_0 = arith.constant 0 : i32
    %c0_i32_1 = arith.constant 0 : i32
    %c0_i32_2 = arith.constant 0 : i32
    return %c0_i32, %arg0, %c0_i32_0, %c0_i32_1 : i32, i32, i32, i32
  }
}

</mosaic_0001>

<bundles_post_ra>
// kernel: tpu_custom_call.1
= control target key start
LH: loop header
LB: loop body
LE: loop exit
PB: predicated region body
PF: predicated region fallthrough
CT: control target
= control target key end

     0   :  { %s4405_s0 = inlined_call_operand.hbm [shape: f32[2,16,64], index: 0, kind: input, shape index: {}]   ;;  %s4406_s1 = inlined_call_operand.vmem [shape: f32[2,4,16,16], index: 1, kind: input, shape index: {}]   ;;  %s4407_s2 = inlined_call_operand.hbm [shape: f32[2,4,16,16], index: 2, kind: input, shape index: {}]   ;;  %s4408_s3 = inlined_call_operand.hbm [shape: bf16[2,64,192], index: 3, kind: input, shape index: {}]   ;;  %s4409_s4 = inlined_call_operand.vmem [shape: f32[2,1,192], index: 4, kind: input, shape index: {}]   ;;  %s4410_s5 = inlined_call_operand.vmem [shape: bf16[2,64,64], index: 5, kind: input, shape index: {}]   ;;  %s4411_s6 = inlined_call_operand.vmem [shape: f32[2,1,64], index: 6, kind: input, shape index: {}]   ;;  %s4412_s7 = inlined_call_operand.vmem [shape: f32[2,1,64], index: 7, kind: input, shape index: {}]   ;;  %s4413_s8 = inlined_call_operand.vmem [shape: f32[2,1,64], index: 8, kind: input, shape index: {}]   ;;  %s4414_s9 = inlined_call_operand.hbm [shape: bf16[2,64,128], index: 9, kind: input, shape index: {}]   ;;  %s4415_s10 = inlined_call_operand.vmem [shape: f32[2,1,128], index: 10, kind: input, shape index: {}]   ;;  %s4416_s11 = inlined_call_operand.vmem [shape: bf16[2,128,64], index: 11, kind: input, shape index: {}]   ;;  %s4417_s12 = inlined_call_operand.vmem [shape: f32[2,1,64], index: 12, kind: input, shape index: {}]   ;;  %s4418_s13 = inlined_call_operand.vmem [shape: f32[2,1,64], index: 13, kind: input, shape index: {}]   ;;  %s4419_s14 = inlined_call_operand.vmem [shape: f32[2,1,64], index: 14, kind: input, shape index: {}]   ;;  %s4420_s15 = inlined_call_operand.hbm [shape: f32[2,2,16,64], index: 15, kind: output, shape index: {}]  }
   0x1   :  { %4435 = sst [smem:[#allocation24_spill]] %s4405_s0 }
   0x2   :  { %4436 = sst [smem:[#allocation25_spill]] %s4408_s3 }
   0x3   :  { %4437 = sst [smem:[#allocation26_spill]] %s4414_s9 }
   0x4   :  { %4438 = sst [smem:[#allocation27_spill]] %s4417_s12 }
   0x5   :  { %4439 = sst [smem:[#allocation28_spill]] %s4418_s13 }
   0x6   :  { %4440 = sst [smem:[#allocation29_spill]] %s4419_s14 }
   0x7   :  { %4441 = sst [smem:[#allocation30_spill]] %s4420_s15 }
   0x8   :  { %20 = vsyncpa [#allocation3], 0 }
   0x9   :  { %22 = vsyncpa [#allocation3 + $0x1], 0 }
   0xa   :  { %23 = vsyncpa [#allocation6], 0 }
   0xb   :  { %25 = vsyncpa [#allocation6 + $0x1], 0 }
   0xc   :  { %26 = vsyncpa [#allocation9], 0 }
   0xd   :  { %27 = vsyncpa [#allocation4], 0 }
   0xe   :  { %29 = vsyncpa [#allocation4 + $0x1], 0  ;;  %s3713_s18 = smov 0   ;;  %s3715_s19 = smov 0  }
   0xf   :  { %s3717_s20 = smov 0   ;;  %s3719_s21 = smov 0  }
  0x10 LB: > { %4442 = sst [smem:[#allocation18_spill]] %s3580_s18  ;;  %s3734_s22 = sadd.s32 4294967295, %s3592_s21   ;;  %s3592_s21 = sphi %s3719_s21, %s4476_s21   ;;  %s3588_s20 = sphi %s3717_s20, %s4478_s20   ;;  %s3584_s19 = sphi %s3715_s19, %s4480_s19   ;;  %s3580_s18 = sphi %s3713_s18, %s4479_s18  }
  0x11   : > { %4443 = sst [smem:[#allocation19_spill]] %s3588_s20  ;;  %s2990_s23 = sadd.s32 4294967294, %s3592_s21  }
  0x12   : > { %p55_p0 = scmp.ne.s32.totalorder %s3584_s19, %s3580_s18  ;;  %p4432_p1 = scmp.eq.s32.totalorder %s3734_s22, 0 }
  0x13   : > { %p383_p2 = scmp.eq.s32.totalorder %s3734_s22, 1  ;;  %p389_p3 = scmp.eq.s32.totalorder %s2990_s23, 1 }
  0x14   : > { %p3743_p4 = por %p4432_p1, %p55_p0  ;;  %p2991_p5 = scmp.ge.s32.totalorder %s3592_s21, 1 }
  0x15   : > { %p3748_p6 = por %p389_p3, %p55_p0  ;;  %p396_p7 = scmp.lt.s32.totalorder %s3592_s21, 3 }
  0x16   : > { %s4444_s24 = scalar_select %p3743_p4, 1, 0 }
  0x17   : > { %s4445_s25 = scalar_select %p3748_p6, 1, 0 }
  0x18   : > { %p3753_p8 = pnand %p2991_p5, %p396_p7  ;;  %s3606_s27 = smov [#allocation7]  }
  0x19   : > { %4446 = sst [smem:[#allocation20_spill]] %s4445_s25  ;;  %s408_s28 = sshll.u32 %s3606_s27, 4  ;;  %s409_s28 = int_to_ptr.vmem [resolvable:$true] %s408_s28 }
  0x1a   : > { %p3234_p9 = pneg %p3753_p8  ;;  %s3607_s30 = smov [#allocation8]  }
  0x1b   : > { %s436_s16 = sshll.u32 %s3607_s30, 4  ;;  %s3433_s17 = scalar_lea.vmem %s409_s28, 2048  ;;  %s437_s16 = int_to_ptr.vmem [resolvable:$true] %s436_s16 }
  0x1c   : > { %p3762_p11 = pnand %p3234_p9, %p4432_p1  ;;  %p3434_p13 = scmp.ne.s32.totalorder %s409_s28, %s3433_s17 }
  0x1d   : > { %p3441_p5 = scmp.lt.s32.totalorder %s409_s28, %s409_s28  ;;  %p3442_p7 = scmp.lt.s32.totalorder %s3433_s17, %s3433_s17 }
  0x1e   : > { %p3424_p12 = pneg %p3762_p11 }
  0x1f   : > { %p3443_p10 = por %p3442_p7, %p3441_p5 }
  0x20   : > { %p3436_p0 = pnand %p3434_p13, %p3424_p12 }
  0x22   : > { %p3437_p3 = pneg %p3436_p0 }
  0x24   : > { %p3444_p9 = pnand %p3443_p10, %p3437_p3 }
  0x26   : > { %3447 = shalt.err (!%p3444_p9)
}
  0x27   : > { %s4423_s23 = smov 128   ;;  %s4425_s27 = smov 8  }
  0x28   : > { %s4449_s3 = sld [smem:[#allocation25_spill]]  ;;  %s3459_s18 = scalar_lea.vmem %s437_s16, 1024 }
  0x29   : > { %p3460_p13 = scmp.ne.s32.totalorder %s437_s16, %s3459_s18  ;;  %p3467_p10 = scmp.lt.s32.totalorder %s437_s16, %s437_s16 }
  0x2a   : > { %p3468_p3 = scmp.lt.s32.totalorder %s3459_s18, %s3459_s18 }
  0x2b   : > { %p3462_p0 = pnand %p3460_p13, %p3424_p12 }
  0x2c   : > { %p3469_p7 = por %p3468_p3, %p3467_p10 }
  0x2d   : > { %p3463_p5 = pneg %p3462_p0 }
  0x2e   : > { %3237 = dma.hbm_to_vmem [thread:$0]  (!%p3762_p11), %s4449_s3, 2048, %s409_s28, [#allocation6], %s4423_s23, %s4423_s23, %s4425_s27  }
  0x2f   : > { %p3470_p9 = pnand %p3469_p7, %p3463_p5 }
  0x31   : > { %3473 = shalt.err (!%p3470_p9)
}
  0x32   : > { %s3610_s17 = smov 64   ;;  %s3611_s25 = smov 4  }
  0x33   : > { %s4450_s9 = sld [smem:[#allocation26_spill]]  ;;  %s3788_s30 = sadd.s32 1, %s3592_s21  }
  0x34   : > { %4451 = sst [smem:[#allocation21_spill]] %s3788_s30  ;;  %s39_s23 = ssub.s32 %s3592_s21, %s3788_s30 }
  0x35   : > { %p40_p12 = scmp.eq.s32.totalorder %s39_s23, 0  ;;  %s42_s27 = sadd.s32 1, %s3588_s20 }
  0x36   : > { %p49_p13 = scmp.ne.s32.totalorder %s3588_s20, %s3584_s19  ;;  %p50_p0 = scmp.eq.s32.totalorder %s3592_s21, 0 }
  0x37   : > { %s3797_s3 = scalar_select %p40_p12, %s3588_s20, %s42_s27  }
  0x38   : > { %p51_p5 = por %p50_p0, %p49_p13  ;;  %p3801_p10 = por %p383_p2, %p49_p13 }
  0x39   : > { %3240 = dma.hbm_to_vmem [thread:$0]  (!%p3762_p11), %s4450_s9, 1024, %s437_s16, [#allocation9], %s3610_s17, %s3610_s17, %s3611_s25  }
  0x3a   : > { %4452 = sst [smem:[#allocation22_spill]] %s3797_s3  ;;  %p3254_p3 = scmp.lt.s32.totalorder %s3592_s21, 2 }
  0x3b   : > { %s4453_s15 = scalar_select %p3801_p10, 1, 0 }
  0x3c   : > { %s3807_s29 = sand.u32 1, %s3588_s20   ;;  %s3079_s23 = sshll.u32 %s3592_s21, 8 }
  0x3d   : > { %4454 = sst [smem:[#allocation23_spill]] %s4453_s15  ;;  %s2995_s16 = sshll.u32 %s3807_s29, 4 }
  0x3e   : > { %s4455_s0 = sld [smem:[#allocation24_spill]]  ;;  %s469_s27 = scalar_lea.vmem [#allocation2], %s2995_s16 }
  0x3f   : > { %s476_s18 = sshll.u32 %s469_s27, 4  ;;  %p3818_p2 = pnand %p3254_p3, %p51_p5  ;;  %s3816_s18 = int_to_ptr.vmem [resolvable:$true] %s476_s18 }
  0x40   : > { %s466_s30 = scalar_lea.sflag [#allocation3], %s3807_s29 }
  0x41   : > { %p3476_p7 = pneg %p3818_p2 }
  0x44   : > { %s3814_s28 = scalar_lea.hbm %s4455_s0, %s3079_s23  ;;  %s3479_s17 = scalar_lea.hbm %s4455_s0, 512 }
  0x45   : > { %s3474_s15 = scalar_lea.hbm %s3814_s28, 256  ;;  %p3480_p13 = scmp.lt.s32.totalorder %s3814_s28, %s4455_s0 }
  0x46   : > { %p3475_p11 = scmp.ne.s32.totalorder %s3814_s28, %s3474_s15  ;;  %p3481_p0 = scmp.lt.s32.totalorder %s3479_s17, %s3474_s15 }
  0x48   : > { %p3477_p9 = pnand %p3476_p7, %p3475_p11  ;;  %p3482_p5 = por %p3481_p0, %p3480_p13 }
  0x4a   : > { %p3478_p12 = pneg %p3477_p9 }
  0x4c   : > { %p3483_p3 = pnand %p3482_p5, %p3478_p12 }
  0x4e   : > { %3486 = shalt.err (!%p3483_p3)
}
  0x4f   : > { %s3487_s3 = scalar_lea.vmem %s3816_s18, 256  ;;  %s3612_s16 = smov [#allocation2]  }
  0x50   : > { %p3488_p1 = scmp.ne.s32.totalorder %s3816_s18, %s3487_s3  ;;  %s3492_s23 = sshll.u32 %s3612_s16, 4  ;;  %s3493_s23 = int_to_ptr.vmem [resolvable:$false] %s3492_s23 }
  0x51   : > { %s3494_s20 = scalar_lea.vmem %s3493_s23, 512  ;;  %p3495_p6 = scmp.lt.s32.totalorder %s3816_s18, %s3493_s23 }
  0x52   : > { %p3490_p11 = pnand %p3488_p1, %p3476_p7  ;;  %p3496_p10 = scmp.lt.s32.totalorder %s3494_s20, %s3487_s3 }
  0x54   : > { %p3491_p9 = pneg %p3490_p11  ;;  %p3497_p4 = por %p3496_p10, %p3495_p6 }
  0x56   : > { %p3498_p13 = pnand %p3497_p4, %p3491_p9 }
  0x58   : > { %3501 = shalt.err (!%p3498_p13)
}
  0x59   : > { %s4457_s15 = smov 8   ;;  %s4458_s17 = smov 128  }
  0x5a   : > { %3244 = dma.hbm_to_vmem [thread:$0]  (!%p3818_p2), %s3814_s28, 256, %s3816_s18, %s466_s30, %s4458_s17, %s4458_s17, %s4457_s15  }
  0x5b   : > { %s3080_s25 = sshll.u32 %s3592_s21, 10  ;;  %s4459_s16 = sshll.u32 %s3807_s29, 6 }
  0x5c   : > { %s3858_s20 = scalar_lea.hbm %s4407_s2, %s3080_s25  ;;  %s498_s23 = scalar_lea.vmem [#allocation5], %s4459_s16 }
  0x5d   : > { %s505_s0 = sshll.u32 %s498_s23, 4  ;;  %s4460_s14 = sand.u32 1, %s3592_s21   ;;  %s3862_s0 = int_to_ptr.vmem [resolvable:$true] %s505_s0 }
  0x5e   : > { %s495_s13 = scalar_lea.sflag [#allocation6], %s4460_s14  ;;  %s3502_s12 = scalar_lea.hbm %s3858_s20, 1024 }
  0x5f   : > { %p3503_p1 = scmp.ne.s32.totalorder %s3858_s20, %s3502_s12  ;;  %s3507_s18 = scalar_lea.hbm %s4407_s2, 2048 }
  0x60   : > { %p3508_p10 = scmp.lt.s32.totalorder %s3858_s20, %s4407_s2  ;;  %p3509_p12 = scmp.lt.s32.totalorder %s3507_s18, %s3502_s12 }
  0x61   : > { %p3505_p4 = pnand %p3503_p1, %p3476_p7 }
  0x62   : > { %p3510_p0 = por %p3509_p12, %p3508_p10 }
  0x63   : > { %p3506_p6 = pneg %p3505_p4 }
  0x65   : > { %p3511_p5 = pnand %p3510_p0, %p3506_p6 }
  0x67   : > { %3514 = shalt.err (!%p3511_p5)
}
  0x68   : > { %s3515_s14 = scalar_lea.vmem %s3862_s0, 1024  ;;  %s3613_s27 = smov [#allocation5]  }
  0x69   : > { %p3516_p3 = scmp.ne.s32.totalorder %s3862_s0, %s3515_s14  ;;  %s3520_s3 = sshll.u32 %s3613_s27, 4  ;;  %s3521_s3 = int_to_ptr.vmem [resolvable:$false] %s3520_s3 }
  0x6a   : > { %s3522_s16 = scalar_lea.vmem %s3521_s3, 2048  ;;  %p3523_p13 = scmp.lt.s32.totalorder %s3862_s0, %s3521_s3 }
  0x6b   : > { %p3518_p11 = pnand %p3516_p3, %p3476_p7  ;;  %p3524_p1 = scmp.lt.s32.totalorder %s3522_s16, %s3515_s14 }
  0x6d   : > { %p3519_p9 = pneg %p3518_p11  ;;  %p3525_p4 = por %p3524_p1, %p3523_p13 }
  0x6f   : > { %p3526_p10 = pnand %p3525_p4, %p3519_p9 }
  0x71   : > { %3529 = shalt.err (!%p3526_p10)
}
  0x72   : > { %3247 = dma.hbm_to_vmem [thread:$0]  (!%p3818_p2), %s3858_s20, 1024, %s3862_s0, %s495_s13, %s4458_s17, %s4458_s17, %s4457_s15  }
  0x73   : > { %517 = sbr.rel (%p3753_p8) target bundleno = 2752 (0xac0), region = 80  ;;  %s3894_s12 = sand.u32 (!%p3753_p8), 1, %s3584_s19  }
  0x74   : > { %s3002_s23 = sshll.u32 (!%p3753_p8), %s3894_s12, 4  ;;  %s520_s30 = scalar_lea.sflag (!%p3753_p8), [#allocation3], %s3894_s12 }
  0x75   : > { %s523_s28 = scalar_lea.vmem (!%p3753_p8), [#allocation2], %s3002_s23  ;;  %p4461_p7 = scmp.ne.s32.totalorder (!%p3753_p8), %s4444_s24, 0 }
  0x78   : > { %3559 = dma.done.wait (%p4461_p7), %s520_s30, 256  }
  0x79   : > { %3561 = vsyncadd (%p4461_p7), %s520_s30, 4294967040  ;;  %s528_s0 = sand.u32 1, %s3734_s22   ;;  %s3003_s9 = sshll.u32 %s3894_s12, 6 }
  0x7a   : > { %s529_s13 = scalar_lea.sflag [#allocation6], %s528_s0  ;;  %s532_s26 = scalar_lea.vmem [#allocation5], %s3003_s9 }
  0x7b   : > { %3563 = dma.done.wait (%p4461_p7), %s529_s13, 1024  }
  0x7c   : > { %3565 = vsyncadd (%p4461_p7), %s529_s13, 4294966272  ;;  %p4462_p8 = scmp.eq.s32.totalorder %s3734_s22, 0 }
  0x7e   : > { %3567 = dma.done.wait (%p4462_p8), [#allocation6], 2048   ;;  %p4463_p2 = pmov %p4462_p8 }
  0x80   : > { %3569 = vsyncadd (%p4463_p2), [#allocation6], 4294965248  ;;  %p4464_p6 = pmov %p4463_p2 }
  0x81   : > { %p4465_p12 = pmov %p4463_p2 }
  0x82   : > { %3571 = dma.done.wait (%p4464_p6), [#allocation9], 1024  }
  0x83   : > { %3573 = vsyncadd (%p4465_p12), [#allocation9], 4294966272  ;;  %p597_p0 = scmp.lt.s32.totalorder %s3734_s22, 1  ;;  %s3006_s15 = sshll.u32 %s3894_s12, 5  ;;  %v603_v0 = vld [vmem:[%s523_s28] sm:$0xff]   ;;  %v604_v1 = vld [vmem:[%s523_s28 + $0x8] sm:$0xff]  }
  0x84   : > { %v3938_v10 = vld [vmem:[%s532_s26] sm:$0xff]  ;;  %v3940_v11 = vld [vmem:[%s532_s26 + $0x8] sm:$0xff]  ;;  %v3942_v12 = vld [vmem:[%s532_s26 + $0x10] sm:$0xff]  ;;  %s3954_s25 = scalar_lea.vmem [#allocation10], %s3006_s15  ;;  %s3960_s14 = smov 0  }
  0x85   : > { %s598_s17 = scalar_select %p597_p0, %s3734_s22, 1  ;;  %v3944_v13 = vld [vmem:[%s532_s26 + $0x18] sm:$0xff]  ;;  %v3946_v14 = vld [vmem:[%s532_s26 + $0x20] sm:$0xff]  ;;  %v3948_v15 = vld [vmem:[%s532_s26 + $0x28] sm:$0xff] }
  0x86   : > { %v3950_v16 = vld [vmem:[%s532_s26 + $0x30] sm:$0xff]  ;;  %v3952_v17 = vld [vmem:[%s532_s26 + $0x38] sm:$0xff] }
  0x87   : > { %s3081_s24 = sshll.u32 %s598_s17, 6 }
  0x88   : > { %s601_s29 = scalar_lea.vmem %s4406_s1, %s3081_s24 }
  0x89   : > { %v3922_v2 = vld [vmem:[%s601_s29] sm:$0xff]  ;;  %v3924_v3 = vld [vmem:[%s601_s29 + $0x8] sm:$0xff]  ;;  %v3926_v4 = vld [vmem:[%s601_s29 + $0x10] sm:$0xff] }
  0x8a   : > { %v3928_v5 = vld [vmem:[%s601_s29 + $0x18] sm:$0xff]  ;;  %v3930_v6 = vld [vmem:[%s601_s29 + $0x20] sm:$0xff]  ;;  %v3932_v7 = vld [vmem:[%s601_s29 + $0x28] sm:$0xff] }
  0x8b   : > { %v3934_v8 = vld [vmem:[%s601_s29 + $0x30] sm:$0xff]  ;;  %v3936_v9 = vld [vmem:[%s601_s29 + $0x38] sm:$0xff] }
  0x8c LB: >> { %v3614_v18 = vmov 0   ;;  %s3082_s27 = sshll.u32 %s3604_s14, 6  ;;  %v629_v27 = vpack.c.bf16 %v3596_v1, %v3600_v0  ;;  %vm695_vm0 = vcmask 523264   ;;  %v645_v28 = vlaneseq  ;;  %s3011_s28 = sshll.u32 %s3604_s14, 1  ;;  %s3604_s14 = sphi %s3960_s14, %s626_s14   ;;  %v3600_v0 = vphi %v603_v0, %v2791_v0   ;;  %v3596_v1 = vphi %v604_v1, %v2792_v1  }
  0x8d   : >> { %731 = vmatprep.mubr.bf16.mxu1 %v3614_v18  ;;  %s632_s3 = scalar_lea.vmem [#allocation7], %s3082_s27  ;;  %s3975_s30 = scalar_lea.vmem %s4416_s11, %s3082_s27  ;;  %v3619_v38 = vmov 1983009808   ;;  %v3620_v42 = vmov 1934713408   ;;  %vm3622_vm1 = vmmov 0  }
  0x8e   : >> { %v3354_v19 = vld [vmem:[%s632_s3 + $0x34] ss:$8 sps:$4 sm:$0xff]   ;;  %v3356_v20 = vld [vmem:[%s632_s3 + $0x30] ss:$8 sps:$4 sm:$0xff]   ;;  %v3357_v21 = vld [vmem:[%s632_s3 + $0x24] ss:$8 sps:$4 sm:$0xff]   ;;  %s642_s13 = scalar_lea.vmem %s4409_s4, %s3011_s28  ;;  %v765_v39 = vunpack.c.l.s4 %v3619_v38  ;;  %v797_v43 = vunpack.c.l.s4 %v3620_v42  ;;  %s2415_s9 = scalar_lea.vmem %s4411_s6, %s3604_s14 }
  0x8f   : >> { %707 = vmatprep.subr.bf16.mxu1 %v3354_v19  ;;  %v3359_v22 = vld [vmem:[%s632_s3 + $0x20] ss:$8 sps:$4 sm:$0xff]   ;;  %v3360_v23 = vld [vmem:[%s632_s3 + $0x14] ss:$8 sps:$4 sm:$0xff]   ;;  %v3362_v24 = vld [vmem:[%s632_s3 + $0x10] ss:$8 sps:$4 sm:$0xff]   ;;  %s2495_s18 = scalar_lea.vmem %s4413_s8, %s3604_s14 }
  0x90   : >> { %708 = vmatpush1.bf16.msra.mxu1 %v3356_v20  ;;  %v3363_v25 = vld [vmem:[%s632_s3 + $0x4] ss:$8 sps:$4 sm:$0xff]   ;;  %v3365_v26 = vld [vmem:[%s632_s3] ss:$8 sps:$4 sm:$0xff]   ;;  %v646_v29 = vshrl.u32 %v645_v28, 7  ;;  %s3615_s26 = smov 96   ;;  %v766_v44 = vunpack.c.0.s8 %v765_v39  ;;  %v798_v48 = vunpack.c.0.s8 %v797_v43 }
  0x91   : >> { %709 = vmatprep.subr.bf16.mxu1 %v3357_v21  ;;  %v643_v31 = vld [vmem:[%s642_s13] sm:$0x3]  ;;  %s3616_s15 = smov 112   ;;  %s3617_s17 = smov 80   ;;  %vm1634_vm2 = vcmask 130048   ;;  %vm2397_vm3 = vcmask 261120  }
  0x92   : >> { %v647_v30 = vsub.s32 0, %v646_v29  ;;  %s3618_s24 = smov 64   ;;  %v651_v45 = vsub.s32 1, %v646_v29  ;;  %v3995_v51 = vsub.s32 %v766_v44, %v646_v29  ;;  %v4000_v61 = vsub.s32 %v798_v48, %v646_v29  ;;  %s3083_s20 = sshll.u32 %s3604_s14, 5 }
  0x93   : >> { %s4250_s27 = scalar_lea.vmem %s4410_s5, %s3083_s20  ;;  %s3623_s3 = smov 32   ;;  %vm2400_vm4 = vcmask 392192  }
  0x94   : >> { %710 = vmatpush1.bf16.msra.mxu1 %v3359_v22  ;;  %v648_v32 = vrot.slane %v643_v31, %v647_v30  ;;  %v3997_v52 = vrot.slane %v643_v31, %v651_v45  ;;  %v3621_v22 = vmov 0.0   ;;  %s3624_s16 = smov 16   ;;  %s3625_s23 = smov 48  }
  0x95   : >> { %711 = vmatprep.subr.bf16.mxu1 %v3360_v23  ;;  %3134 = vmatprep.subr.bf16.mxu0 %v3621_v22  ;;  %s2542_s13 = scalar_lea.vmem [#allocation8], %s3083_s20 }
  0x96   : >> { %3136 = vmatprep.mubr.msk.bf16.mxu0 %vm3622_vm1, %v3621_v22 }
  0x98   : >> { %712 = vmatpush1.bf16.msra.mxu1 %v3362_v24 }
  0x99   : >> { %713 = vmatprep.subr.bf16.mxu1 %v3363_v25 }
  0x9c   : >> { %714 = vmatpush1.bf16.msra.mxu1 %v3365_v26 }
  0x9d   : >> { %3122 = vmatprep.subr.bf16.mxu1 %v3621_v22 }
  0x9f   : >> { %3020 = vmatmul.mubr.msk.bf16.vlgmr.msra.gmra.mxu1 %vm695_vm0, %v629_v27 }
  0xa0   : >> { %3124 = vmatprep.mubr.msk.bf16.mxu1 %vm3622_vm1, %v3621_v22 }
 0x15f   : >> { %v733_v33 = vpop.f32.mrf.mxu1 }
 0x160   : >> { %v734_v34 = vadd.f32 %v733_v33, %v648_v32 }
 0x161   : >> { %v735_v35 = vpop.f32.mrf.mxu1 }
 0x162   : >> { %750 = vrot.lane.b32.xlu1 %v734_v34, %s3615_s26  ;;  %744 = vrot.lane.b32.xlu0 %v734_v34, %s3616_s15  ;;  %v4011_v23 = vadd.f32 %v735_v35, %v3997_v52 }
 0x163   : >> { %v737_v36 = vpop.f32.mrf.mxu1 }
 0x164   : >> { %v738_v37 = vadd.f32 %v737_v36, %v648_v32 }
 0x166   : >> { %752 = vrot.lane.b32.xlu1 %v738_v37, %s3615_s26  ;;  %746 = vrot.lane.b32.xlu0 %v738_v37, %s3616_s15 }
 0x16a   : >> { %758 = vrot.lane.b32.xlu1 %v738_v37, %s3617_s17  ;;  %756 = vrot.lane.b32.xlu0 %v734_v34, %s3617_s17 }
 0x16e   : >> { %1040 = vrot.lane.b32.xlu1 %v738_v37, %s3618_s24  ;;  %1038 = vrot.lane.b32.xlu0 %v734_v34, %s3618_s24 }
 0x1d4   : >> { %v751_v40 = vpop.permute.xlu1 %750  ;;  %v745_v41 = vpop.permute.xlu0 %744 }
 0x1d5   : >> { %1042 = vrot.lane.b32.xlu0 %v745_v41, %s3618_s24  ;;  %v762_v53 = vcombine.low %v734_v34, %v751_v40  ;;  %v763_v54 = vcombine.high %v734_v34, %v751_v40 }
 0x1d7   : >> { %v770_v24 = vrot.slane %v762_v53, %v3995_v51  ;;  %v777_v25 = vrot.slane %v763_v54, %v3995_v51 }
 0x1d8   : >> { %v753_v46 = vpop.permute.xlu1 %752  ;;  %v747_v47 = vpop.permute.xlu0 %746 }
 0x1d9   : >> { %1046 = vrot.lane.b32.xlu0 %v751_v40, %s3618_s24  ;;  %1044 = vrot.lane.b32.xlu1 %v747_v47, %s3618_s24  ;;  %v830_v49 = vcombine.low %v738_v37, %v753_v46  ;;  %v831_v50 = vcombine.high %v738_v37, %v753_v46 }
 0x1db   : >> { %v838_v62 = vrot.slane %v830_v49, %v3995_v51  ;;  %v845_v63 = vrot.slane %v831_v50, %v3995_v51 }
 0x1dc   : >> { %v759_v55 = vpop.permute.xlu1 %758  ;;  %v757_v56 = vpop.permute.xlu0 %756 }
 0x1dd   : >> { %v846_v57 = vcombine.low %v747_v47, %v759_v55  ;;  %v847_v58 = vcombine.high %v747_v47, %v759_v55  ;;  %v778_v59 = vcombine.low %v745_v41, %v757_v56  ;;  %v779_v60 = vcombine.high %v745_v41, %v757_v56  ;;  %1048 = vrot.lane.b32.xlu1 %v753_v46, %s3618_s24 }
 0x1de   : >> { %1050 = vrot.lane.b32.xlu0 %v757_v56, %s3618_s24 }
 0x1df   : >> { %v854_v18 = vrot.slane %v846_v57, %v3995_v51  ;;  %v861_v19 = vrot.slane %v847_v58, %v3995_v51  ;;  %v786_v20 = vrot.slane %v778_v59, %v3995_v51  ;;  %v793_v21 = vrot.slane %v779_v60, %v3995_v51 }
 0x1e1   : >> { %v862_v26 = vcombine.low %v838_v62, %v854_v18  ;;  %v863_v27 = vcombine.high %v838_v62, %v854_v18  ;;  %v878_v28 = vcombine.low %v845_v63, %v861_v19  ;;  %v879_v29 = vcombine.high %v845_v63, %v861_v19  ;;  %1052 = vrot.lane.b32.xlu1 %v759_v55, %s3618_s24  ;;  %s4468_s24 = sld [smem:[#allocation29_spill]] }
 0x1e2   : >> { %v794_v30 = vcombine.low %v770_v24, %v786_v20  ;;  %v795_v31 = vcombine.high %v770_v24, %v786_v20  ;;  %v810_v32 = vcombine.low %v777_v25, %v793_v21  ;;  %v811_v33 = vcombine.high %v777_v25, %v793_v21 }
 0x1e3   : >> { %v870_v34 = vrot.slane %v862_v26, %v4000_v61  ;;  %v877_v35 = vrot.slane %v863_v27, %v4000_v61  ;;  %v886_v36 = vrot.slane %v878_v28, %v4000_v61  ;;  %v893_v37 = vrot.slane %v879_v29, %v4000_v61 }
 0x1e4   : >> { %v802_v38 = vrot.slane %v794_v30, %v4000_v61  ;;  %v809_v39 = vrot.slane %v795_v31, %v4000_v61  ;;  %v818_v40 = vrot.slane %v810_v32, %v4000_v61  ;;  %v825_v41 = vrot.slane %v811_v33, %v4000_v61 }
 0x1e5   : >> { %v966_v42 = vcombine.low %v870_v34, %v877_v35  ;;  %v3023_v43 = vcombine.high %v870_v34, %v877_v35  ;;  %v982_v44 = vcombine.low %v886_v36, %v893_v37  ;;  %v3024_v45 = vcombine.high %v886_v36, %v893_v37  ;;  %1340 = vrot.lane.b32.xlu1 %v4011_v23, %s3616_s15 }
 0x1e6   : >> { %v898_v46 = vcombine.low %v802_v38, %v809_v39  ;;  %v3021_v47 = vcombine.high %v802_v38, %v809_v39  ;;  %v914_v48 = vcombine.low %v818_v40, %v825_v41  ;;  %v3022_v49 = vcombine.high %v818_v40, %v825_v41 }
 0x1e7   : >> { %v973_v50 = vrot.slane %v966_v42, %v3995_v51  ;;  %v981_v53 = vrot.slane %v3023_v43, %v3995_v51  ;;  %v989_v54 = vrot.slane %v982_v44, %v3995_v51  ;;  %v997_v55 = vrot.slane %v3024_v45, %v3995_v51  ;;  %v1039_v45 = vpop.permute.xlu0 %1038  ;;  %s2749_s20 = scalar_lea.vmem %s4468_s24, %s3604_s14 }
 0x1e8   : >> { %v905_v56 = vrot.slane %v898_v46, %v3995_v51  ;;  %v913_v57 = vrot.slane %v3021_v47, %v3995_v51  ;;  %v921_v58 = vrot.slane %v914_v48, %v3995_v51  ;;  %v929_v59 = vrot.slane %v3022_v49, %v3995_v51  ;;  %v1041_v46 = vpop.permute.xlu1 %1040 }
 0x1e9   : >> { %v998_v60 = vcombine.low %v973_v50, %v981_v53  ;;  %v1014_v62 = vcombine.low %v989_v54, %v997_v55  ;;  %v999_v25 = vcombine.high %v973_v50, %v981_v53  ;;  %v1015_v29 = vcombine.high %v989_v54, %v997_v55 }
 0x1ea   : >> { %v930_v63 = vcombine.low %v905_v56, %v913_v57  ;;  %v946_v18 = vcombine.low %v921_v58, %v929_v59  ;;  %v931_v19 = vcombine.high %v905_v56, %v913_v57  ;;  %v947_v24 = vcombine.high %v921_v58, %v929_v59 }
 0x1eb   : >> { %v1006_v20 = vrot.slane %v998_v60, %v4000_v61  ;;  %v1022_v21 = vrot.slane %v1014_v62, %v4000_v61  ;;  %v1013_v32 = vrot.slane %v999_v25, %v4000_v61  ;;  %v1029_v35 = vrot.slane %v1015_v29, %v4000_v61 }
 0x1ec   : >> { %v938_v26 = vrot.slane %v930_v63, %v4000_v61  ;;  %v954_v27 = vrot.slane %v946_v18, %v4000_v61  ;;  %v945_v28 = vrot.slane %v931_v19, %v4000_v61  ;;  %v961_v31 = vrot.slane %v947_v24, %v4000_v61 }
 0x1ed   : >> { %v1030_v30 = vcombine.low %v1006_v20, %v1022_v21  ;;  %v1031_v33 = vcombine.high %v1006_v20, %v1022_v21  ;;  %v1032_v40 = vcombine.low %v1013_v32, %v1029_v35  ;;  %v1033_v41 = vcombine.high %v1013_v32, %v1029_v35 }
 0x1ee   : >> { %v962_v34 = vcombine.low %v938_v26, %v954_v27  ;;  %v963_v36 = vcombine.high %v938_v26, %v954_v27  ;;  %v964_v37 = vcombine.low %v945_v28, %v961_v31  ;;  %v965_v38 = vcombine.high %v945_v28, %v961_v31 }
 0x1f0   : >> { %v4047_v39 = vpack.c.bf16 %v1030_v30, %v962_v34  ;;  %v4049_v42 = vpack.c.bf16 %v1031_v33, %v963_v36  ;;  %v4051_v43 = vpack.c.bf16 %v1032_v40, %v964_v37  ;;  %v4053_v44 = vpack.c.bf16 %v1033_v41, %v965_v38 }
 0x247   : >> { %v1043_v47 = vpop.permute.xlu0 %1042 }
 0x24b   : >> { %v1045_v48 = vpop.permute.xlu1 %1044  ;;  %v1047_v49 = vpop.permute.xlu0 %1046 }
 0x24c   : >> { %v1062_v50 = vcombine.low %v1039_v45, %v1047_v49  ;;  %v1063_v53 = vcombine.high %v1039_v45, %v1047_v49 }
 0x24e   : >> { %v1070_v60 = vrot.slane %v1062_v50, %v3995_v51  ;;  %v1077_v62 = vrot.slane %v1063_v53, %v3995_v51 }
 0x24f   : >> { %v1049_v54 = vpop.permute.xlu1 %1048 }
 0x250   : >> { %v1051_v55 = vpop.permute.xlu0 %1050  ;;  %v1130_v58 = vcombine.low %v1041_v46, %v1049_v54  ;;  %v1131_v59 = vcombine.high %v1041_v46, %v1049_v54 }
 0x251   : >> { %v1078_v56 = vcombine.low %v1043_v47, %v1051_v55  ;;  %v1079_v57 = vcombine.high %v1043_v47, %v1051_v55 }
 0x252   : >> { %v1138_v28 = vrot.slane %v1130_v58, %v3995_v51  ;;  %v1145_v29 = vrot.slane %v1131_v59, %v3995_v51 }
 0x253   : >> { %v1086_v63 = vrot.slane %v1078_v56, %v3995_v51  ;;  %v1093_v18 = vrot.slane %v1079_v57, %v3995_v51  ;;  %v1053_v19 = vpop.permute.xlu1 %1052 }
 0x254   : >> { %v1146_v20 = vcombine.low %v1045_v48, %v1053_v19  ;;  %v1147_v21 = vcombine.high %v1045_v48, %v1053_v19 }
 0x255   : >> { %v1094_v24 = vcombine.low %v1070_v60, %v1086_v63  ;;  %v1095_v25 = vcombine.high %v1070_v60, %v1086_v63  ;;  %v1110_v26 = vcombine.low %v1077_v62, %v1093_v18  ;;  %v1111_v27 = vcombine.high %v1077_v62, %v1093_v18 }
 0x256   : >> { %v1154_v30 = vrot.slane %v1146_v20, %v3995_v51  ;;  %v1161_v31 = vrot.slane %v1147_v21, %v3995_v51 }
 0x257   : >> { %v1102_v32 = vrot.slane %v1094_v24, %v4000_v61  ;;  %v1109_v33 = vrot.slane %v1095_v25, %v4000_v61  ;;  %v1118_v34 = vrot.slane %v1110_v26, %v4000_v61  ;;  %v1125_v35 = vrot.slane %v1111_v27, %v4000_v61 }
 0x258   : >> { %v1162_v36 = vcombine.low %v1138_v28, %v1154_v30  ;;  %v1163_v37 = vcombine.high %v1138_v28, %v1154_v30  ;;  %v1178_v38 = vcombine.low %v1145_v29, %v1161_v31  ;;  %v1179_v40 = vcombine.high %v1145_v29, %v1161_v31 }
 0x259   : >> { %v1198_v41 = vcombine.low %v1102_v32, %v1109_v33  ;;  %v3025_v45 = vcombine.high %v1102_v32, %v1109_v33  ;;  %v1214_v46 = vcombine.low %v1118_v34, %v1125_v35  ;;  %v3026_v47 = vcombine.high %v1118_v34, %v1125_v35 }
 0x25a   : >> { %v1170_v48 = vrot.slane %v1162_v36, %v4000_v61  ;;  %v1177_v49 = vrot.slane %v1163_v37, %v4000_v61  ;;  %v1186_v50 = vrot.slane %v1178_v38, %v4000_v61  ;;  %v1193_v53 = vrot.slane %v1179_v40, %v4000_v61 }
 0x25b   : >> { %v1205_v54 = vrot.slane %v1198_v41, %v3995_v51  ;;  %v1213_v55 = vrot.slane %v3025_v45, %v3995_v51  ;;  %v1221_v56 = vrot.slane %v1214_v46, %v3995_v51  ;;  %v1229_v57 = vrot.slane %v3026_v47, %v3995_v51 }
 0x25c   : >> { %v1266_v58 = vcombine.low %v1170_v48, %v1177_v49  ;;  %v3027_v59 = vcombine.high %v1170_v48, %v1177_v49  ;;  %v1282_v60 = vcombine.low %v1186_v50, %v1193_v53  ;;  %v3028_v62 = vcombine.high %v1186_v50, %v1193_v53 }
 0x25d   : >> { %v1230_v63 = vcombine.low %v1205_v54, %v1213_v55  ;;  %v1246_v18 = vcombine.low %v1221_v56, %v1229_v57  ;;  %v1231_v19 = vcombine.high %v1205_v54, %v1213_v55  ;;  %v1247_v20 = vcombine.high %v1221_v56, %v1229_v57 }
 0x25e   : >> { %v1273_v21 = vrot.slane %v1266_v58, %v3995_v51  ;;  %v1281_v24 = vrot.slane %v3027_v59, %v3995_v51  ;;  %v1289_v25 = vrot.slane %v1282_v60, %v3995_v51  ;;  %v1297_v26 = vrot.slane %v3028_v62, %v3995_v51 }
 0x25f   : >> { %v1238_v27 = vrot.slane %v1230_v63, %v4000_v61  ;;  %v1254_v28 = vrot.slane %v1246_v18, %v4000_v61  ;;  %v1245_v29 = vrot.slane %v1231_v19, %v4000_v61  ;;  %v1261_v30 = vrot.slane %v1247_v20, %v4000_v61 }
 0x260   : >> { %v1298_v31 = vcombine.low %v1273_v21, %v1281_v24  ;;  %v1314_v32 = vcombine.low %v1289_v25, %v1297_v26  ;;  %v1299_v33 = vcombine.high %v1273_v21, %v1281_v24  ;;  %v1315_v34 = vcombine.high %v1289_v25, %v1297_v26 }
 0x261   : >> { %v1262_v40 = vcombine.low %v1238_v27, %v1254_v28  ;;  %v1264_v45 = vcombine.low %v1245_v29, %v1261_v30  ;;  %v1263_v54 = vcombine.high %v1238_v27, %v1254_v28  ;;  %v1265_v58 = vcombine.high %v1245_v29, %v1261_v30 }
 0x262   : >> { %v1306_v35 = vrot.slane %v1298_v31, %v4000_v61  ;;  %v1322_v36 = vrot.slane %v1314_v32, %v4000_v61  ;;  %v1313_v37 = vrot.slane %v1299_v33, %v4000_v61  ;;  %v1329_v38 = vrot.slane %v1315_v34, %v4000_v61 }
 0x264   : >> { %v1330_v41 = vcombine.low %v1306_v35, %v1322_v36  ;;  %v1332_v46 = vcombine.low %v1313_v37, %v1329_v38  ;;  %v1331_v53 = vcombine.high %v1306_v35, %v1322_v36  ;;  %v1333_v57 = vcombine.high %v1313_v37, %v1329_v38 }
 0x266   : >> { %v1334_v47 = vpack.c.bf16 %v1330_v41, %v1262_v40  ;;  %v1336_v48 = vpack.c.bf16 %v1332_v46, %v1264_v45  ;;  %v1335_v55 = vpack.c.bf16 %v1331_v53, %v1263_v54  ;;  %v1337_v59 = vpack.c.bf16 %v1333_v57, %v1265_v58  ;;  %v4136_v54 = vpop.permute.xlu1 %1340 }
 0x268   : >> { %v1639_v49 = vsel %vm1634_vm2, %v1334_v47, 0  ;;  %v1733_v50 = vsel %vm1634_vm2, %v1336_v48, 0  ;;  %v1686_v56 = vsel %vm1634_vm2, %v1335_v55, 0 }
 0x269   : >> { %3123 = vmatpush3.bf16.xpose.msra.mxu1 %v1639_v49  ;;  %3135 = vmatpush3.bf16.xpose.msra.mxu0 %v1733_v50 }
 0x26a   : >> { %3128 = vmatprep.subr.bf16.mxu1 %v3621_v22  ;;  %3146 = vmatprep.subr.bf16.mxu0 %v3621_v22 }
 0x270   : >> { %3125 = vmatmul.mubr.msk.bf16.vlgmr.msra.gmra.mxu1 %vm1634_vm2, %v4047_v39  ;;  %3137 = vmatmul.mubr.msk.bf16.vlgmr.msra.gmra.mxu0 %vm1634_vm2, %v4051_v43  ;;  %v1780_v39 = vsel %vm1634_vm2, %v1337_v59, 0  ;;  %v739_v43 = vpop.f32.mrf.mxu1 }
 0x271   : >> { %3129 = vmatpush3.bf16.xpose.msra.mxu1 %v1686_v56  ;;  %3130 = vmatprep.mubr.msk.bf16.mxu1 %vm3622_vm1, %v3621_v22  ;;  %v4130_v53 = vadd.f32 %v739_v43, %v3997_v52 }
 0x272   : >> { %3140 = vmatprep.subr.bf16.mxu1 %v3621_v22  ;;  %3148 = vmatprep.mubr.msk.bf16.mxu0 %vm3622_vm1, %v3621_v22 }
 0x278   : >> { %3131 = vmatmul.mubr.msk.bf16.vlgmr.msra.gmra.mxu1 %vm1634_vm2, %v4049_v42 }
 0x279   : >> { %3141 = vmatpush3.bf16.xpose.msra.mxu1 %v1780_v39  ;;  %3142 = vmatprep.mubr.msk.bf16.mxu1 %vm3622_vm1, %v3621_v22 }
 0x27a   : >> { %3152 = vmatprep.subr.bf16.mxu1 %v3621_v22 }
 0x280   : >> { %3143 = vmatmul.mubr.msk.bf16.vlgmr.msra.gmra.mxu1 %vm1634_vm2, %v4053_v44 }
 0x281   : >> { %3154 = vmatprep.mubr.msk.bf16.mxu1 %vm3622_vm1, %v3621_v22 }
 0x330   : >> { %v1675_v60 = vpop.f32.mrf.mxu1  ;;  %v1769_v62 = vpop.f32.mrf.mxu0 }
 0x331   : >> { %v1676_v63 = vadd.f32 %v1675_v60, %v3922_v2  ;;  %v1770_v42 = vadd.f32 %v1769_v62, %v3930_v6 }
 0x332   : >> { %v3126_v18 = vpop.f32.mrf.mxu1  ;;  %v3138_v19 = vpop.f32.mrf.mxu0 }
 0x333   : >> { %v1835_v20 = vsel %vm1634_vm2, %v1770_v42, -inf  ;;  %v1823_v21 = vsel %vm1634_vm2, %v1676_v63, -inf }
 0x334   : >> { %1836 = vmax.xlane.f32.xlu1 %v1835_v20  ;;  %v1772_v24 = vpop.f32.mrf.mxu0  ;;  %1824 = vmax.xlane.f32.xlu0 %v1823_v21  ;;  %v1678_v44 = vpop.f32.mrf.mxu1 }
 0x335   : >> { %v1773_v25 = vadd.f32 %v1772_v24, %v3932_v7  ;;  %v1679_v26 = vadd.f32 %v1678_v44, %v3924_v3 }
 0x336   : >> { %v3127_v27 = vpop.f32.mrf.mxu1  ;;  %v3139_v28 = vpop.f32.mrf.mxu0 }
 0x337   : >> { %v1838_v29 = vsel %vm1634_vm2, %v1773_v25, -inf  ;;  %v1826_v30 = vsel %vm1634_vm2, %v1679_v26, -inf }
 0x338   : >> { %1839 = vmax.xlane.f32.xlu0 %v1838_v29  ;;  %1827 = vmax.xlane.f32.xlu1 %v1826_v30  ;;  %v1722_v31 = vpop.f32.mrf.mxu1 }
 0x339   : >> { %v1723_v32 = vadd.f32 %v1722_v31, %v3926_v4 }
 0x33a   : >> { %v3132_v33 = vpop.f32.mrf.mxu1 }
 0x33b   : >> { %v1829_v34 = vsel %vm1634_vm2, %v1723_v32, -inf }
 0x33c   : >> { %1830 = vmax.xlane.f32.xlu0 %v1829_v34  ;;  %v1725_v35 = vpop.f32.mrf.mxu1 }
 0x33d   : >> { %v1726_v36 = vadd.f32 %v1725_v35, %v3928_v5 }
 0x33e   : >> { %v3133_v37 = vpop.f32.mrf.mxu1 }
 0x33f   : >> { %v1832_v38 = vsel %vm1634_vm2, %v1726_v36, -inf }
 0x340   : >> { %1833 = vmax.xlane.f32.xlu0 %v1832_v38  ;;  %v1816_v40 = vpop.f32.mrf.mxu1 }
 0x341   : >> { %v1817_v41 = vadd.f32 %v1816_v40, %v3934_v8 }
 0x342   : >> { %v3144_v45 = vpop.f32.mrf.mxu1 }
 0x343   : >> { %v1841_v46 = vsel %vm1634_vm2, %v1817_v41, -inf }
 0x344   : >> { %1842 = vmax.xlane.f32.xlu1 %v1841_v46  ;;  %v1819_v47 = vpop.f32.mrf.mxu1 }
 0x345   : >> { %v1820_v48 = vadd.f32 %v1819_v47, %v3936_v9 }
 0x346   : >> { %v3145_v49 = vpop.f32.mrf.mxu1 }
 0x347   : >> { %v1844_v50 = vsel %vm1634_vm2, %v1820_v48, -inf }
 0x348   : >> { %1845 = vmax.xlane.f32.xlu0 %v1844_v50 }
 0x355   : >> { %1346 = vrot.lane.b32.xlu1 %v4011_v23, %s3615_s26 }
 0x359   : >> { %1348 = vrot.lane.b32.xlu1 %v4130_v53, %s3615_s26 }
 0x35e   : >> { %1342 = vrot.lane.b32.xlu0 %v4130_v53, %s3616_s15 }
 0x3bd   : >> { %v1837_v55 = vpop.xlane.xlu1 %1836  ;;  %v1825_v56 = vpop.xlane.xlu0 %1824 }
 0x3be   : >> { %v1851_v57 = vsub.f32 %v1770_v42, %v1837_v55  ;;  %v1847_v58 = vsub.f32 %v1676_v63, %v1825_v56 }
 0x3c0   : >> { %v1855_v59 = vmul.f32 1.442695, %v1847_v58  ;;  %v1863_v39 = vmul.f32 1.442695, %v1851_v57 }
 0x3c1   : >> { %v1840_v60 = vpop.xlane.xlu0 %1839  ;;  %v1828_v62 = vpop.xlane.xlu1 %1827 }
 0x3c2   : >> { %v1852_v18 = vsub.f32 %v1773_v25, %v1840_v60  ;;  %v1848_v19 = vsub.f32 %v1679_v26, %v1828_v62  ;;  %3382 = vpow2.f32 %v1855_v59 }
 0x3c3   : >> { %3384 = vpow2.f32 %v1863_v39 }
 0x3c4   : >> { %v1857_v52 = vmul.f32 1.442695, %v1848_v19  ;;  %v1865_v43 = vmul.f32 1.442695, %v1852_v18 }
 0x3c5   : >> { %v1831_v20 = vpop.xlane.xlu0 %1830 }
 0x3c6   : >> { %v1849_v21 = vsub.f32 %v1723_v32, %v1831_v20  ;;  %3386 = vpow2.f32 %v1857_v52 }
 0x3c7   : >> { %3388 = vpow2.f32 %v1865_v43 }
 0x3c8   : >> { %v1859_v24 = vmul.f32 1.442695, %v1849_v21 }
 0x3c9   : >> { %v1834_v44 = vpop.xlane.xlu0 %1833 }
 0x3ca   : >> { %3390 = vpow2.f32 %v1859_v24  ;;  %v1850_v27 = vsub.f32 %v1726_v36, %v1834_v44 }
 0x3cc   : >> { %v1861_v42 = vmul.f32 1.442695, %v1850_v27 }
 0x3cd   : >> { %v1843_v63 = vpop.xlane.xlu1 %1842 }
 0x3ce   : >> { %3392 = vpow2.f32 %v1861_v42  ;;  %v1853_v28 = vsub.f32 %v1817_v41, %v1843_v63 }
 0x3cf   : >> { %v4138_v29 = vpop.eup %3382 }
 0x3d0   : >> { %v1867_v25 = vmul.f32 1.442695, %v1853_v28  ;;  %v1871_v26 = vsel %vm1634_vm2, %v4138_v29, 0.0  ;;  %v4142_v31 = vpop.eup %3384 }
 0x3d1   : >> { %v1846_v30 = vpop.xlane.xlu0 %1845  ;;  %1872 = vadd.xlane.f32.xlu1 %v1871_v26  ;;  %v1883_v35 = vsel %vm1634_vm2, %v4142_v31, 0.0  ;;  %v1347_v55 = vpop.permute.xlu1 %1346 }
 0x3d2   : >> { %3394 = vpow2.f32 %v1867_v25  ;;  %v1854_v32 = vsub.f32 %v1820_v48, %v1846_v30  ;;  %v1358_v27 = vcombine.low %v4011_v23, %v1347_v55 }
 0x3d3   : >> { %v4144_v33 = vpop.eup %3386 }
 0x3d4   : >> { %v1869_v34 = vmul.f32 1.442695, %v1854_v32  ;;  %v1874_v36 = vsel %vm1634_vm2, %v4144_v33, 0.0  ;;  %v4150_v37 = vpop.eup %3388 }
 0x3d5   : >> { %1884 = vadd.xlane.f32.xlu1 %v1883_v35  ;;  %1875 = vadd.xlane.f32.xlu0 %v1874_v36  ;;  %v1886_v41 = vsel %vm1634_vm2, %v4150_v37, 0.0  ;;  %v1349_v56 = vpop.permute.xlu1 %1348  ;;  %v1343_v57 = vpop.permute.xlu0 %1342  ;;  %v1366_v36 = vrot.slane %v1358_v27, %v3995_v51 }
 0x3d6   : >> { %3396 = vpow2.f32 %v1869_v34  ;;  %v1426_v52 = vcombine.low %v4130_v53, %v1349_v56  ;;  %v1427_v43 = vcombine.high %v4130_v53, %v1349_v56 }
 0x3d7   : >> { %v4152_v38 = vpop.eup %3390 }
 0x3d8   : >> { %v1877_v40 = vsel %vm1634_vm2, %v4152_v38, 0.0  ;;  %v1434_v42 = vrot.slane %v1426_v52, %v3995_v51  ;;  %v1441_v63 = vrot.slane %v1427_v43, %v3995_v51 }
 0x3d9   : >> { %1878 = vadd.xlane.f32.xlu1 %v1877_v40  ;;  %1887 = vadd.xlane.f32.xlu0 %v1886_v41 }
 0x3db   : >> { %v4158_v45 = vpop.eup %3392 }
 0x3dc   : >> { %v1880_v46 = vsel %vm1634_vm2, %v4158_v45, 0.0 }
 0x3dd   : >> { %1881 = vadd.xlane.f32.xlu0 %v1880_v46 }
 0x3df   : >> { %v4162_v47 = vpop.eup %3394 }
 0x3e0   : >> { %v1889_v48 = vsel %vm1634_vm2, %v4162_v47, 0.0 }
 0x3e1   : >> { %1890 = vadd.xlane.f32.xlu1 %v1889_v48 }
 0x3e3   : >> { %v4166_v49 = vpop.eup %3396 }
 0x3e4   : >> { %v1892_v50 = vsel %vm1634_vm2, %v4166_v49, 0.0 }
 0x3e5   : >> { %1893 = vadd.xlane.f32.xlu0 %v1892_v50 }
 0x3f2   : >> { %1354 = vrot.lane.b32.xlu1 %v4130_v53, %s3617_s17  ;;  %v1359_v53 = vcombine.high %v4011_v23, %v1347_v55 }
 0x3f4   : >> { %v1373_v55 = vrot.slane %v1359_v53, %v3995_v51 }
 0x3fb   : >> { %1352 = vrot.lane.b32.xlu0 %v4011_v23, %s3617_s17  ;;  %s2493_s17 = scalar_lea.vmem %s4412_s7, %s3604_s14 }
 0x45a   : >> { %v1873_v58 = vpop.xlane.xlu1 %1872 }
 0x45e   : >> { %v1876_v59 = vpop.xlane.xlu0 %1875  ;;  %v1885_v39 = vpop.xlane.xlu1 %1884 }
 0x45f   : >> { %3398 = vrcp.f32 %v1876_v59 }
 0x460   : >> { %3400 = vrcp.f32 %v1873_v58 }
 0x461   : >> { %3402 = vrcp.f32 %v1885_v39 }
 0x462   : >> { %v1888_v60 = vpop.xlane.xlu0 %1887  ;;  %v1879_v62 = vpop.xlane.xlu1 %1878 }
 0x466   : >> { %v1882_v18 = vpop.xlane.xlu0 %1881 }
 0x467   : >> { %3404 = vrcp.f32 %v1882_v18 }
 0x468   : >> { %3406 = vrcp.f32 %v1879_v62 }
 0x469   : >> { %3408 = vrcp.f32 %v1888_v60 }
 0x46a   : >> { %v1891_v19 = vpop.xlane.xlu1 %1890 }
 0x46e   : >> { %v1355_v20 = vpop.permute.xlu1 %1354  ;;  %v1894_v21 = vpop.xlane.xlu0 %1893 }
 0x46f   : >> { %v1442_v24 = vcombine.low %v1343_v57, %v1355_v20  ;;  %v1443_v44 = vcombine.high %v1343_v57, %v1355_v20  ;;  %3410 = vrcp.f32 %v1894_v21 }
 0x470   : >> { %3412 = vrcp.f32 %v1891_v19 }
 0x471   : >> { %v1450_v28 = vrot.slane %v1442_v24, %v3995_v51  ;;  %v1457_v25 = vrot.slane %v1443_v44, %v3995_v51  ;;  %v3399_v44 = vpop.eup %3398 }
 0x472   : >> { %v1353_v26 = vpop.permute.xlu0 %1352 }
 0x473   : >> { %v1458_v30 = vcombine.low %v1434_v42, %v1450_v28  ;;  %v1459_v32 = vcombine.high %v1434_v42, %v1450_v28  ;;  %v1474_v34 = vcombine.low %v1441_v63, %v1457_v25  ;;  %v1475_v35 = vcombine.high %v1441_v63, %v1457_v25 }
 0x474   : >> { %v1374_v40 = vcombine.low %v4136_v54, %v1353_v26  ;;  %v1375_v41 = vcombine.high %v4136_v54, %v1353_v26  ;;  %v3401_v26 = vpop.eup %3400 }
 0x475   : >> { %v1466_v46 = vrot.slane %v1458_v30, %v4000_v61  ;;  %v1473_v48 = vrot.slane %v1459_v32, %v4000_v61  ;;  %v1482_v50 = vrot.slane %v1474_v34, %v4000_v61  ;;  %v1489_v23 = vrot.slane %v1475_v35, %v4000_v61 }
 0x476   : >> { %v1382_v56 = vrot.slane %v1374_v40, %v3995_v51  ;;  %v1389_v57 = vrot.slane %v1375_v41, %v3995_v51  ;;  %v1904_v40 = vmul.f32 %v3399_v44, %v4144_v33 }
 0x477   : >> { %v1562_v58 = vcombine.low %v1466_v46, %v1473_v48  ;;  %v3031_v59 = vcombine.high %v1466_v46, %v1473_v48  ;;  %v1578_v39 = vcombine.low %v1482_v50, %v1489_v23  ;;  %v3032_v60 = vcombine.high %v1482_v50, %v1489_v23 }
 0x478   : >> { %v1390_v54 = vcombine.low %v1366_v36, %v1382_v56  ;;  %v1391_v62 = vcombine.high %v1366_v36, %v1382_v56  ;;  %v1406_v18 = vcombine.low %v1373_v55, %v1389_v57  ;;  %v1407_v52 = vcombine.high %v1373_v55, %v1389_v57  ;;  %v3403_v36 = vpop.eup %3402 }
 0x479   : >> { %v1569_v43 = vrot.slane %v1562_v58, %v3995_v51  ;;  %v1577_v20 = vrot.slane %v3031_v59, %v3995_v51  ;;  %v1585_v24 = vrot.slane %v1578_v39, %v3995_v51  ;;  %v1593_v21 = vrot.slane %v3032_v60, %v3995_v51  ;;  %v3405_v41 = vpop.eup %3404 }
 0x47a   : >> { %v1398_v27 = vrot.slane %v1390_v54, %v4000_v61  ;;  %v1405_v42 = vrot.slane %v1391_v62, %v4000_v61  ;;  %v1414_v63 = vrot.slane %v1406_v18, %v4000_v61  ;;  %v1421_v28 = vrot.slane %v1407_v52, %v4000_v61  ;;  %v3407_v19 = vpop.eup %3406 }
 0x47b   : >> { %v1594_v25 = vcombine.low %v1569_v43, %v1577_v20  ;;  %v1610_v53 = vcombine.low %v1585_v24, %v1593_v21  ;;  %v1595_v57 = vcombine.high %v1569_v43, %v1577_v20  ;;  %v1611_v58 = vcombine.high %v1585_v24, %v1593_v21  ;;  %v3409_v54 = vpop.eup %3408 }
 0x47c   : >> { %v1494_v30 = vcombine.low %v1398_v27, %v1405_v42  ;;  %v3029_v32 = vcombine.high %v1398_v27, %v1405_v42  ;;  %v1510_v34 = vcombine.low %v1414_v63, %v1421_v28  ;;  %v3030_v35 = vcombine.high %v1414_v63, %v1421_v28  ;;  %v3411_v63 = vpop.eup %3410 }
 0x47d   : >> { %v1602_v55 = vrot.slane %v1594_v25, %v4000_v61  ;;  %v1618_v56 = vrot.slane %v1610_v53, %v4000_v61  ;;  %v1903_v62 = vmul.f32 %v3401_v26, %v4138_v29  ;;  %v1906_v18 = vmul.f32 %v3405_v41, %v4158_v45 }
 0x47e   : >> { %v1501_v46 = vrot.slane %v1494_v30, %v3995_v51  ;;  %v1509_v48 = vrot.slane %v3029_v32, %v3995_v51  ;;  %v1517_v50 = vrot.slane %v1510_v34, %v3995_v51  ;;  %v1525_v23 = vrot.slane %v3030_v35, %v3995_v51 }
 0x47f   : >> { %v1626_v43 = vcombine.low %v1602_v55, %v1618_v56  ;;  %v1912_v20 = vadd.f32 %v1904_v40, %v3940_v11  ;;  %v1905_v24 = vmul.f32 %v3407_v19, %v4152_v38  ;;  %v1609_v21 = vrot.slane %v1595_v57, %v4000_v61  ;;  %v3413_v40 = vpop.eup %3412 }
 0x480   : >> { %v1526_v59 = vcombine.low %v1501_v46, %v1509_v48  ;;  %v1542_v39 = vcombine.low %v1517_v50, %v1525_v23  ;;  %v1527_v60 = vcombine.high %v1501_v46, %v1509_v48  ;;  %v1543_v33 = vcombine.high %v1517_v50, %v1525_v23 }
 0x481   : >> { %v1627_v25 = vcombine.high %v1602_v55, %v1618_v56  ;;  %v1625_v45 = vrot.slane %v1611_v58, %v4000_v61  ;;  %v1911_v53 = vadd.f32 %v1903_v62, %v3938_v10  ;;  %v1914_v26 = vadd.f32 %v1906_v18, %v3944_v13 }
 0x482   : >> { %v1534_v52 = vrot.slane %v1526_v59, %v4000_v61  ;;  %v1550_v44 = vrot.slane %v1542_v39, %v4000_v61  ;;  %v1541_v27 = vrot.slane %v1527_v60, %v4000_v61  ;;  %v1557_v42 = vrot.slane %v1543_v33, %v4000_v61  ;;  %v3366_v39 = vld [vmem:[%s4250_s27 + $0x18] sm:$0xff]   ;;  %v3367_v60 = vld [vmem:[%s4250_s27 + $0x10] sm:$0xff]  }
 0x483   : >> { %v1913_v41 = vadd.f32 %v1905_v24, %v3942_v12  ;;  %v1919_v38 = vpack.c.bf16 %v1912_v20, %v1911_v53  ;;  %v1628_v46 = vcombine.low %v1609_v21, %v1625_v45  ;;  %v1629_v48 = vcombine.high %v1609_v21, %v1625_v45 }
 0x484   : >> { %v1558_v28 = vcombine.low %v1534_v52, %v1550_v44  ;;  %v1559_v29 = vcombine.high %v1534_v52, %v1550_v44  ;;  %v1560_v34 = vcombine.low %v1541_v27, %v1557_v42  ;;  %v1561_v35 = vcombine.high %v1541_v27, %v1557_v42 }
 0x485   : >> { %v1920_v50 = vpack.c.bf16 %v1914_v26, %v1913_v41  ;;  %v1908_v23 = vmul.f32 %v3409_v54, %v4150_v37  ;;  %v1910_v19 = vmul.f32 %v3411_v63, %v4166_v49  ;;  %v1907_v57 = vmul.f32 %v3403_v36, %v4142_v31 }
 0x486   : >> { %v1630_v30 = vpack.c.bf16 %v1626_v43, %v1558_v28  ;;  %v1631_v32 = vpack.c.bf16 %v1627_v25, %v1559_v29  ;;  %v1632_v55 = vpack.c.bf16 %v1628_v46, %v1560_v34  ;;  %v1633_v56 = vpack.c.bf16 %v1629_v48, %v1561_v35 }
 0x487   : >> { %v1909_v58 = vmul.f32 %v3413_v40, %v4162_v47  ;;  %v1916_v37 = vadd.f32 %v1908_v23, %v3948_v15  ;;  %v1918_v49 = vadd.f32 %v1910_v19, %v3952_v17  ;;  %v1915_v31 = vadd.f32 %v1907_v57, %v3946_v14 }
 0x488   : >> { %3147 = vmatpush3.bf16.msra.mxu0 %v1630_v30  ;;  %3153 = vmatpush3.bf16.msra.mxu1 %v1631_v32 }
 0x489   : >> { %3158 = vmatprep.subr.bf16.mxu0 %v3621_v22  ;;  %3164 = vmatprep.subr.bf16.mxu1 %v3621_v22  ;;  %v1917_v47 = vadd.f32 %v1909_v58, %v3950_v16  ;;  %v1921_v36 = vpack.c.bf16 %v1916_v37, %v1915_v31 }
 0x48b   : >> { %3149 = vmatmul.mubr.msk.bf16.vlgmr.msra.gmra.mxu0 %vm1634_vm2, %v1919_v38  ;;  %3155 = vmatmul.mubr.msk.bf16.vlgmr.msra.gmra.mxu1 %vm1634_vm2, %v1920_v50  ;;  %v1922_v59 = vpack.c.bf16 %v1918_v49, %v1917_v47 }
 0x48c   : >> { %3159 = vmatpush3.bf16.msra.mxu0 %v1632_v55  ;;  %3165 = vmatpush3.bf16.msra.mxu1 %v1633_v56 }
 0x48d   : >> { %3160 = vmatprep.mubr.msk.bf16.mxu0 %vm3622_vm1, %v3621_v22  ;;  %3166 = vmatprep.mubr.msk.bf16.mxu1 %vm3622_vm1, %v3621_v22 }
 0x48e   : >> { %3170 = vmatprep.subr.bf16.mxu0 %v3621_v22  ;;  %3182 = vmatprep.subr.bf16.mxu1 %v3621_v22 }
 0x493   : >> { %3161 = vmatmul.mubr.msk.bf16.vlgmr.msra.gmra.mxu0 %vm1634_vm2, %v1921_v36  ;;  %3167 = vmatmul.mubr.msk.bf16.vlgmr.msra.gmra.mxu1 %vm1634_vm2, %v1922_v59 }
 0x494   : >> { %3178 = vmatprep.mubr.msk.bf16.mxu0 %vm3622_vm1, %v3621_v22  ;;  %3190 = vmatprep.mubr.msk.bf16.mxu1 %vm3622_vm1, %v3621_v22 }
 0x495   : >> { %3171 = vmatpush3.bf16.msra.mxu0 %v3366_v39 }
 0x496   : >> { %3172 = vmatprep.subr.bf16.mxu0 %v3621_v22 }
 0x499   : >> { %3173 = vmatpush3.bf16.msra.mxu0 %v3367_v60 }
 0x49a   : >> { %3174 = vmatprep.subr.bf16.mxu0 %v3621_v22 }
 0x54b   : >> { %v1960_v33 = vpop.f32.mrf.mxu0  ;;  %v2004_v54 = vpop.f32.mrf.mxu1 }
 0x54d   : >> { %v3150_v62 = vpop.f32.mrf.mxu0  ;;  %v3156_v18 = vpop.f32.mrf.mxu1 }
 0x54f   : >> { %v1963_v52 = vpop.f32.mrf.mxu0  ;;  %v2007_v44 = vpop.f32.mrf.mxu1 }
 0x551   : >> { %v3151_v27 = vpop.f32.mrf.mxu0  ;;  %v3157_v42 = vpop.f32.mrf.mxu1 }
 0x553   : >> { %v2048_v63 = vpop.f32.mrf.mxu0  ;;  %v2092_v43 = vpop.f32.mrf.mxu1 }
 0x554   : >> { %v2099_v20 = vcombine.low %v1960_v33, %v2048_v63  ;;  %v2100_v24 = vcombine.high %v1960_v33, %v2048_v63  ;;  %v2115_v21 = vcombine.low %v2004_v54, %v2092_v43  ;;  %v2116_v28 = vcombine.high %v2004_v54, %v2092_v43 }
 0x555   : >> { %v3162_v29 = vpop.f32.mrf.mxu0  ;;  %v3168_v25 = vpop.f32.mrf.mxu1 }
 0x556   : >> { %v2107_v45 = vrot.slane %v2099_v20, %v3995_v51  ;;  %v2114_v53 = vrot.slane %v2100_v24, %v3995_v51  ;;  %v2123_v26 = vrot.slane %v2115_v21, %v3995_v51  ;;  %v2130_v30 = vrot.slane %v2116_v28, %v3995_v51 }
 0x557   : >> { %v2051_v32 = vpop.f32.mrf.mxu0  ;;  %v2095_v34 = vpop.f32.mrf.mxu1 }
 0x558   : >> { %v2131_v35 = vcombine.low %v2107_v45, %v2123_v26  ;;  %v2132_v41 = vcombine.high %v2107_v45, %v2123_v26  ;;  %v2147_v40 = vcombine.low %v2114_v53, %v2130_v30  ;;  %v2148_v38 = vcombine.high %v2114_v53, %v2130_v30 }
 0x559   : >> { %v2167_v46 = vcombine.low %v1963_v52, %v2051_v32  ;;  %v2168_v48 = vcombine.high %v1963_v52, %v2051_v32  ;;  %v2183_v50 = vcombine.low %v2007_v44, %v2095_v34  ;;  %v2184_v23 = vcombine.high %v2007_v44, %v2095_v34  ;;  %v3163_v19 = vpop.f32.mrf.mxu0  ;;  %v3169_v55 = vpop.f32.mrf.mxu1 }
 0x55a   : >> { %v2139_v56 = vrot.slane %v2131_v35, %v4000_v61  ;;  %v2146_v57 = vrot.slane %v2132_v41, %v4000_v61  ;;  %v2155_v58 = vrot.slane %v2147_v40, %v4000_v61  ;;  %v2162_v37 = vrot.slane %v2148_v38, %v4000_v61  ;;  %v3368_v41 = vld [vmem:[%s4250_s27 + $0x8] sm:$0xff]  }
 0x55b   : >> { %v2175_v49 = vrot.slane %v2167_v46, %v3995_v51  ;;  %v2182_v31 = vrot.slane %v2168_v48, %v3995_v51  ;;  %v2191_v47 = vrot.slane %v2183_v50, %v3995_v51  ;;  %v2198_v36 = vrot.slane %v2184_v23, %v3995_v51  ;;  %3175 = vmatpush3.bf16.msra.mxu0 %v3368_v41 }
 0x55c   : >> { %v2235_v59 = vcombine.low %v2139_v56, %v2146_v57  ;;  %v3041_v39 = vcombine.high %v2139_v56, %v2146_v57  ;;  %v2251_v60 = vcombine.low %v2155_v58, %v2162_v37  ;;  %v3042_v33 = vcombine.high %v2155_v58, %v2162_v37  ;;  %3176 = vmatprep.subr.bf16.mxu0 %v3621_v22 }
 0x55d   : >> { %v2199_v54 = vcombine.low %v2175_v49, %v2191_v47  ;;  %v2200_v62 = vcombine.high %v2175_v49, %v2191_v47  ;;  %v2215_v18 = vcombine.low %v2182_v31, %v2198_v36  ;;  %v2216_v52 = vcombine.high %v2182_v31, %v2198_v36  ;;  %v3369_v47 = vld [vmem:[%s4250_s27] sm:$0xff]  }
 0x55e   : >> { %v2242_v44 = vrot.slane %v2235_v59, %v3995_v51  ;;  %v2250_v27 = vrot.slane %v3041_v39, %v3995_v51  ;;  %v2258_v42 = vrot.slane %v2251_v60, %v3995_v51  ;;  %v2266_v63 = vrot.slane %v3042_v33, %v3995_v51 }
 0x55f   : >> { %v2207_v43 = vrot.slane %v2199_v54, %v4000_v61  ;;  %v2214_v20 = vrot.slane %v2200_v62, %v4000_v61  ;;  %v2223_v24 = vrot.slane %v2215_v18, %v4000_v61  ;;  %v2230_v21 = vrot.slane %v2216_v52, %v4000_v61  ;;  %3177 = vmatpush3.bf16.msra.mxu0 %v3369_v47 }
 0x560   : >> { %v2268_v28 = vcombine.high %v2242_v44, %v2250_v27  ;;  %v2284_v29 = vcombine.high %v2258_v42, %v2266_v63  ;;  %v2267_v25 = vcombine.low %v2242_v44, %v2250_v27  ;;  %v2283_v45 = vcombine.low %v2258_v42, %v2266_v63  ;;  %3194 = vmatprep.subr.bf16.mxu0 %v3621_v22 }
 0x561   : >> { %v2303_v53 = vcombine.low %v2207_v43, %v2214_v20  ;;  %v3043_v26 = vcombine.high %v2207_v43, %v2214_v20  ;;  %v2319_v30 = vcombine.low %v2223_v24, %v2230_v21  ;;  %v3044_v32 = vcombine.high %v2223_v24, %v2230_v21 }
 0x562   : >> { %v2275_v34 = vrot.slane %v2267_v25, %v4000_v61  ;;  %v2291_v35 = vrot.slane %v2283_v45, %v4000_v61  ;;  %v2282_v50 = vrot.slane %v2268_v28, %v4000_v61  ;;  %v2298_v23 = vrot.slane %v2284_v29, %v4000_v61 }
 0x563   : >> { %v2310_v40 = vrot.slane %v2303_v53, %v3995_v51  ;;  %v2318_v38 = vrot.slane %v3043_v26, %v3995_v51  ;;  %v2326_v46 = vrot.slane %v2319_v30, %v3995_v51  ;;  %v2334_v48 = vrot.slane %v3044_v32, %v3995_v51 }
 0x564   : >> { %v2299_v19 = vcombine.low %v2275_v34, %v2291_v35  ;;  %v2301_v36 = vcombine.low %v2282_v50, %v2298_v23  ;;  %v2300_v39 = vcombine.high %v2275_v34, %v2291_v35  ;;  %v2302_v52 = vcombine.high %v2282_v50, %v2298_v23  ;;  %v3047_v34 = vld [vmem:[%s2415_s9] ss:$0 sm:$0xff] }
 0x565   : >> { %v2336_v55 = vcombine.high %v2310_v40, %v2318_v38  ;;  %v2352_v56 = vcombine.high %v2326_v46, %v2334_v48  ;;  %v2335_v57 = vcombine.low %v2310_v40, %v2318_v38  ;;  %v2351_v58 = vcombine.low %v2326_v46, %v2334_v48 }
 0x567   : >> { %v2350_v37 = vrot.slane %v2336_v55, %v4000_v61  ;;  %v2366_v49 = vrot.slane %v2352_v56, %v4000_v61  ;;  %v2343_v31 = vrot.slane %v2335_v57, %v4000_v61  ;;  %v2359_v51 = vrot.slane %v2351_v58, %v4000_v61 }
 0x569   : >> { %v2369_v59 = vcombine.low %v2350_v37, %v2366_v49  ;;  %v2368_v60 = vcombine.high %v2343_v31, %v2359_v51  ;;  %v2367_v33 = vcombine.low %v2343_v31, %v2359_v51  ;;  %v2370_v18 = vcombine.high %v2350_v37, %v2366_v49 }
 0x56b   : >> { %v3344_v54 = vpack.i.bf16 %v2369_v59, %v2301_v36  ;;  %v3339_v62 = vpack.i.bf16 %v2368_v60, %v2300_v39  ;;  %v3349_v44 = vpack.i.bf16 %v2370_v18, %v2302_v52  ;;  %v3371_v59 = vld [vmem:[%s2542_s13 + $0x10] sm:$0xff]   ;;  %v3372_v39 = vld [vmem:[%s2542_s13 + $0x8] sm:$0xff]   ;;  %v3374_v60 = vld [vmem:[%s3975_s30 + $0x38] sm:$0xff]  }
 0x56c   : >> { %v3377_v18 = vld [vmem:[%s3975_s30 + $0x20] sm:$0xff]   ;;  %v3378_v52 = vld [vmem:[%s3975_s30 + $0x18] sm:$0xff]  }
 0x56d   : >> { %3345 = vrot.lane.b32.xlu1 %v3344_v54, %s3623_s3  ;;  %3340 = vrot.lane.b32.xlu0 %v3339_v62, %s3624_s16  ;;  %v3373_v54 = vld [vmem:[%s2542_s13] sm:$0xff]   ;;  %v3376_v62 = vld [vmem:[%s3975_s30 + $0x28] sm:$0xff]   ;;  %s2551_s3 = scalar_lea.vmem %s4415_s10, %s3604_s14 }
 0x571   : >> { %3350 = vrot.lane.b32.xlu0 %v3349_v44, %s3625_s23  ;;  %s4466_s23 = sld [smem:[#allocation27_spill]] }
 0x577   : >> { %s2648_s28 = scalar_lea.vmem %s4466_s23, %s3604_s14 }
 0x5df   : >> { %v3346_v61 = vpop.permute.xlu1 %3345  ;;  %v3341_v27 = vpop.permute.xlu0 %3340 }
 0x5e0   : >> { %v3343_v42 = vunpack.i.h.bf16 %v3341_v27  ;;  %v3342_v63 = vunpack.i.l.bf16 %v3341_v27  ;;  %v3348_v43 = vunpack.i.h.bf16 %v3346_v61  ;;  %v3347_v20 = vunpack.i.l.bf16 %v3346_v61 }
 0x5e2   : >> { %v2395_v24 = vsel %vm1634_vm2, %v2299_v19, %v3342_v63  ;;  %v2396_v21 = vsel %vm1634_vm2, %v2367_v33, %v3343_v42  ;;  %v3375_v33 = vld [vmem:[%s3975_s30 + $0x30] sm:$0xff]  }
 0x5e3   : >> { %v3351_v28 = vpop.permute.xlu0 %3350  ;;  %v2398_v45 = vsel %vm2397_vm3, %v2395_v24, %v3347_v20  ;;  %v2399_v53 = vsel %vm2397_vm3, %v2396_v21, %v3348_v43  ;;  %v3053_v21 = vld [vmem:[%s2493_s17] ss:$0 sm:$0xff] }
 0x5e4   : >> { %v3353_v29 = vunpack.i.h.bf16 %v3351_v28  ;;  %v3352_v25 = vunpack.i.l.bf16 %v3351_v28 }
 0x5e6   : >> { %v2401_v26 = vsel %vm2400_vm4, %v2398_v45, %v3352_v25  ;;  %v2402_v30 = vsel %vm2400_vm4, %v2399_v53, %v3353_v29  ;;  %v3054_v45 = vld [vmem:[%s2495_s18] ss:$0 sm:$0xff]  ;;  %s3009_s18 = sshll.u32 %s3604_s14, 4 }
 0x5e7   : >> { %v2403_v32 = vpack.c.bf16 %v2402_v30, %v2401_v26  ;;  %s2793_s29 = scalar_lea.vmem %s3954_s25, %s3009_s18 [#allocation10] }
 0x5e9   : >> { %3179 = vmatmul.mubr.msk.bf16.vlgmr.msra.gmra.mxu0 %vm695_vm0, %v2403_v32 }
 0x5ea   : >> { %3210 = vmatprep.mubr.msk.bf16.mxu0 %vm3622_vm1, %v3621_v22  ;;  %3195 = vmatpush3.bf16.msra.mxu0 %v3374_v60 }
 0x5eb   : >> { %3196 = vmatprep.subr.bf16.mxu0 %v3621_v22 }
 0x5ee   : >> { %3197 = vmatpush3.bf16.msra.mxu0 %v3375_v33 }
 0x5ef   : >> { %3198 = vmatprep.subr.bf16.mxu0 %v3621_v22 }
 0x5f2   : >> { %3199 = vmatpush3.bf16.msra.mxu0 %v3376_v62 }
 0x5f3   : >> { %3200 = vmatprep.subr.bf16.mxu0 %v3621_v22 }
 0x5f6   : >> { %3201 = vmatpush3.bf16.msra.mxu0 %v3377_v18 }
 0x5f7   : >> { %3202 = vmatprep.subr.bf16.mxu0 %v3621_v22 }
 0x5fa   : >> { %3203 = vmatpush3.bf16.msra.mxu0 %v3378_v52 }
 0x5fb   : >> { %3204 = vmatprep.subr.bf16.mxu0 %v3621_v22 }
 0x6a9   : >> { %v2484_v35 = vpop.f32.mrf.mxu0 }
 0x6aa   : >> { %v2485_v41 = vadd.f32 %v3047_v34, %v2484_v35  ;;  %v3380_v35 = vld [vmem:[%s3975_s30 + $0x8] sm:$0xff]  }
 0x6ab   : >> { %v3180_v40 = vpop.f32.mrf.mxu0 }
 0x6ac   : >> { %v2491_v38 = vadd.f32 %v3600_v0, %v2485_v41  ;;  %v3381_v41 = vld [vmem:[%s3975_s30] sm:$0xff]  }
 0x6ad   : >> { %v2487_v46 = vpop.f32.mrf.mxu0  ;;  %v3056_v40 = vld [vmem:[%s2551_s3] ss:$0 sm:$0xff] }
 0x6ae   : >> { %v2488_v48 = vadd.f32 %v3047_v34, %v2487_v46  ;;  %v2497_v50 = vsel %vm695_vm0, %v2491_v38, 0.0  ;;  %v3379_v34 = vld [vmem:[%s3975_s30 + $0x10] sm:$0xff]  }
 0x6af   : >> { %2498 = vadd.xlane.f32.xlu1 %v2497_v50  ;;  %v3181_v23 = vpop.f32.mrf.mxu0  ;;  %3205 = vmatpush3.bf16.msra.mxu0 %v3379_v34 }
 0x6b0   : >> { %v2492_v19 = vadd.f32 %v3596_v1, %v2488_v48  ;;  %v3370_v1 = vld [vmem:[%s2542_s13 + $0x18] sm:$0xff]   ;;  %3206 = vmatprep.subr.bf16.mxu0 %v3621_v22  ;;  %s4467_s13 = sld [smem:[#allocation28_spill]] }
 0x6b1   : >> { %3183 = vmatpush3.bf16.msra.mxu1 %v3370_v1 }
 0x6b2   : >> { %v2500_v55 = vsel %vm695_vm0, %v2492_v19, 0.0  ;;  %3184 = vmatprep.subr.bf16.mxu1 %v3621_v22 }
 0x6b3   : >> { %2501 = vadd.xlane.f32.xlu0 %v2500_v55  ;;  %3207 = vmatpush3.bf16.msra.mxu0 %v3380_v35 }
 0x6b4   : >> { %3208 = vmatprep.subr.bf16.mxu0 %v3621_v22 }
 0x6b5   : >> { %3185 = vmatpush3.bf16.msra.mxu1 %v3371_v59 }
 0x6b6   : >> { %3186 = vmatprep.subr.bf16.mxu1 %v3621_v22  ;;  %s2747_s26 = scalar_lea.vmem %s4467_s13, %s3604_s14  ;;  %s626_s14 = sadd.s32 1, %s3604_s14  }
 0x6b7   : >> { %3209 = vmatpush3.bf16.msra.mxu0 %v3381_v41  ;;  %p623_p5 = scmp.ge.s32.totalorder %s626_s14, 2  }
 0x6b8   : > { %s2797_s27 = scalar_lea.sflag (%p623_p5), [#allocation4], %s3894_s12 }
 0x6b9   : >> { %3187 = vmatpush3.bf16.msra.mxu1 %v3372_v39 }
 0x6ba   : >> { %3188 = vmatprep.subr.bf16.mxu1 %v3621_v22  ;;  %v3063_v22 = vld [vmem:[%s2648_s28] ss:$0 sm:$0xff] }
 0x6bd   : >> { %3189 = vmatpush3.bf16.msra.mxu1 %v3373_v54 }
 0x738   : >> { %v2499_v56 = vpop.xlane.xlu1 %2498 }
 0x739   : >> { %v2504_v57 = vmul.f32 0.015625, %v2499_v56 }
 0x73b   : >> { %v2506_v58 = vsub.f32 %v2491_v38, %v2504_v57 }
 0x73c   : >> { %v2502_v37 = vpop.xlane.xlu0 %2501 }
 0x73d   : >> { %v2505_v49 = vmul.f32 0.015625, %v2502_v37  ;;  %v2508_v31 = vmul.f32 %v2506_v58, %v2506_v58 }
 0x73f   : >> { %v2507_v0 = vsub.f32 %v2492_v19, %v2505_v49  ;;  %v2510_v51 = vsel %vm695_vm0, %v2508_v31, 0.0 }
 0x740   : >> { %2511 = vadd.xlane.f32.xlu0 %v2510_v51 }
 0x741   : >> { %v2509_v47 = vmul.f32 %v2507_v0, %v2507_v0 }
 0x743   : >> { %v2513_v36 = vsel %vm695_vm0, %v2509_v47, 0.0 }
 0x744   : >> { %2514 = vadd.xlane.f32.xlu1 %v2513_v36 }
 0x7c9   : >> { %v2512_v44 = vpop.xlane.xlu0 %2511 }
 0x7ca   : >> { %v2516_v61 = vmul.f32 0.015625, %v2512_v44 }
 0x7cc   : >> { %v2518_v27 = vadd.f32 1e-05, %v2516_v61 }
 0x7cd   : >> { %v2515_v42 = vpop.xlane.xlu1 %2514 }
 0x7ce   : >> { %3414 = vrsqrt.f32 %v2518_v27  ;;  %v2517_v63 = vmul.f32 0.015625, %v2515_v42 }
 0x7d0   : >> { %v2519_v43 = vadd.f32 1e-05, %v2517_v63 }
 0x7d2   : >> { %3416 = vrsqrt.f32 %v2519_v43 }
 0x7db   : >> { %v3415_v20 = vpop.eup %3414 }
 0x7dc   : >> { %v2522_v24 = vmul.f32 %v3415_v20, %v2506_v58 }
 0x7de   : >> { %v2530_v25 = vmul.f32 %v3053_v21, %v2522_v24 }
 0x7df   : >> { %v3417_v28 = vpop.eup %3416 }
 0x7e0   : >> { %v2523_v29 = vmul.f32 %v3417_v28, %v2507_v0  ;;  %v2538_v26 = vadd.f32 %v3054_v45, %v2530_v25 }
 0x7e2   : >> { %v2531_v53 = vmul.f32 %v3053_v21, %v2523_v29  ;;  %v3072_v29 = vld [vmem:[%s2747_s26] ss:$0 sm:$0xff] }
 0x7e4   : >> { %v2539_v30 = vadd.f32 %v3054_v45, %v2531_v53  ;;  %v3073_v45 = vld [vmem:[%s2749_s20] ss:$0 sm:$0xff] }
 0x7e6   : >> { %v2540_v32 = vpack.c.bf16 %v2539_v30, %v2538_v26 }
 0x7e8   : >> { %3191 = vmatmul.mubr.msk.bf16.vlgmr.msra.gmra.mxu1 %vm695_vm0, %v2540_v32 }
 0x8a8   : >> { %v2620_v38 = vpop.f32.mrf.mxu1 }
 0x8a9   : >> { %v2621_v48 = vadd.f32 %v3056_v40, %v2620_v38 }
 0x8aa   : >> { %v3192_v46 = vpop.f32.mrf.mxu1 }
 0x8ab   : >> { %v2627_v55 = vmax.f32 %v2621_v48, 0.0 }
 0x8ac   : >> { %v2623_v50 = vpop.f32.mrf.mxu1 }
 0x8ad   : >> { %v2624_v23 = vadd.f32 %v3056_v40, %v2623_v50 }
 0x8ae   : >> { %v3193_v19 = vpop.f32.mrf.mxu1 }
 0x8af   : >> { %v2628_v56 = vmax.f32 %v2624_v23, 0.0 }
 0x8b1   : >> { %v2629_v57 = vpack.c.bf16 %v2628_v56, %v2627_v55 }
 0x8b3   : >> { %3211 = vmatmul.mubr.bf16.vlgmr.msra.gmra.mxu0 %v2629_v57 }
 0x973   : >> { %v2738_v58 = vpop.f32.mrf.mxu0 }
 0x974   : >> { %v2739_v37 = vadd.f32 %v3063_v22, %v2738_v58 }
 0x975   : >> { %v3212_v49 = vpop.f32.mrf.mxu0 }
 0x976   : >> { %v2745_v31 = vadd.f32 %v2739_v37, %v2538_v26 }
 0x977   : >> { %v2741_v0 = vpop.f32.mrf.mxu0 }
 0x978   : >> { %v2742_v51 = vadd.f32 %v3063_v22, %v2741_v0  ;;  %v2751_v47 = vsel %vm695_vm0, %v2745_v31, 0.0 }
 0x979   : >> { %2752 = vadd.xlane.f32.xlu0 %v2751_v47  ;;  %v3213_v36 = vpop.f32.mrf.mxu0 }
 0x97a   : >> { %v2746_v1 = vadd.f32 %v2742_v51, %v2539_v30 }
 0x97c   : >> { %v2754_v59 = vsel %vm695_vm0, %v2746_v1, 0.0 }
 0x97d   : >> { %2755 = vadd.xlane.f32.xlu1 %v2754_v59 }
 0xa02   : >> { %v2753_v39 = vpop.xlane.xlu0 %2752 }
 0xa03   : >> { %v2757_v60 = vmul.f32 0.015625, %v2753_v39 }
 0xa05   : >> { %v2759_v33 = vsub.f32 %v2745_v31, %v2757_v60 }
 0xa06   : >> { %v2756_v54 = vpop.xlane.xlu1 %2755 }
 0xa07   : >> { %v2758_v62 = vmul.f32 0.015625, %v2756_v54  ;;  %v2761_v18 = vmul.f32 %v2759_v33, %v2759_v33 }
 0xa09   : >> { %v2760_v52 = vsub.f32 %v2746_v1, %v2758_v62  ;;  %v2763_v44 = vsel %vm695_vm0, %v2761_v18, 0.0 }
 0xa0a   : >> { %2764 = vadd.xlane.f32.xlu0 %v2763_v44 }
 0xa0b   : >> { %v2762_v61 = vmul.f32 %v2760_v52, %v2760_v52 }
 0xa0d   : >> { %v2766_v27 = vsel %vm695_vm0, %v2762_v61, 0.0 }
 0xa0e   : >> { %2767 = vadd.xlane.f32.xlu1 %v2766_v27 }
 0xa93   : >> { %v2765_v42 = vpop.xlane.xlu0 %2764 }
 0xa94   : >> { %v2769_v63 = vmul.f32 0.015625, %v2765_v42 }
 0xa96   : >> { %v2771_v43 = vadd.f32 1e-05, %v2769_v63 }
 0xa97   : >> { %v2768_v20 = vpop.xlane.xlu1 %2767 }
 0xa98   : >> { %3418 = vrsqrt.f32 %v2771_v43  ;;  %v2770_v24 = vmul.f32 0.015625, %v2768_v20 }
 0xa9a   : >> { %v2772_v21 = vadd.f32 1e-05, %v2770_v24 }
 0xa9c   : >> { %3420 = vrsqrt.f32 %v2772_v21 }
 0xaa5   : >> { %v3419_v28 = vpop.eup %3418 }
 0xaa6   : >> { %v2775_v25 = vmul.f32 %v3419_v28, %v2759_v33 }
 0xaa8   : >> { %v2783_v53 = vmul.f32 %v3072_v29, %v2775_v25 }
 0xaa9   : >> { %v3421_v26 = vpop.eup %3420 }
 0xaaa   : >> { %v2791_v0 = vadd.f32 %v3073_v45, %v2783_v53   ;;  %v2776_v30 = vmul.f32 %v3421_v26, %v2760_v52 }
 0xaac   : >> { %2794 = vst.msk [vmem:[%s2793_s29] sm:$0xff] %vm695_vm0, %v2791_v0  ;;  %v2784_v32 = vmul.f32 %v3072_v29, %v2776_v30  ;;  %625 = sbr.rel (!%p623_p5) target bundleno = 140 (0x8c), region = 174 }
 0xaae   : >> { %v2792_v1 = vadd.f32 %v3073_v45, %v2784_v32  }
 0xab0   : >> { %2795 = vst.msk [vmem:[%s2793_s29 + $0x8] sm:$0xff] %vm695_vm0, %v2792_v1 }
 0xab1   : > { %s4469_s3 = sld [smem:[#allocation23_spill]]  ;;  %s3086_s16 = sshll.u32 %s3734_s22, 8 }
 0xab2   : > { %s2820_s30 = sshll.u32 %s3954_s25, 4  ;;  %s4470_s0 = sld [smem:[#allocation30_spill]]  ;;  %s2821_s30 = int_to_ptr.vmem [resolvable:$true] %s2820_s30 }
 0xab3   : > { %s3626_s14 = smov 256   ;;  %s3627_s12 = smov 512  }
 0xab4   : > { %s3628_s13 = smov 2   ;;  %s3629_s26 = smov 128  }
 0xab5   : > { %s3630_s22 = smov 8   ;;  %s3631_s25 = smov 131072  }
 0xab6   : > { %s3632_s15 = smov 0  }
 0xab7   : > { %p4471_p3 = scmp.ne.s32.totalorder %s4469_s3, 0 }
 0xab8   : > { %s2809_s9 = scalar_lea.hbm %s4470_s0, %s3086_s16 }
 0xab9   : > { %3226 = sst [smem:[#allocation12]] (%p4471_p3), %s3626_s14 }
 0xaba   : > { %3227 = sst [smem:[#allocation12 + $0x1]] (%p4471_p3), %s3627_s12 }
 0xabb   : > { %3228 = sst [smem:[#allocation12 + $0x2]] (%p4471_p3), %s3628_s13 }
 0xabc   : > { %3229 = sst [smem:[#allocation12 + $0x3]] (%p4471_p3), %s3629_s26 }
 0xabd   : > { %3230 = sst [smem:[#allocation12 + $0x4]] (%p4471_p3), %s3629_s26 }
 0xabe   : > { %3231 = sst [smem:[#allocation12 + $0x5]] (%p4471_p3), %s3630_s22 }
 0xabf   : > { %3232 = dma.general (%p4471_p3), %s2821_s30, 512, %s2809_s9, %s2797_s27, %s3631_s25, [#allocation12], %s3632_s15, 0  }
 0xac0 PF: > { %s4472_s17 = sld [smem:[#allocation18_spill]]  ;;  %p4475_p9 = scmp.ge.s32.totalorder %s3592_s21, 2 }
 0xac1   : > { %s4473_s24 = sld [smem:[#allocation20_spill]] }
 0xac6   : > { %s2848_s20 = sand.u32 1, %s4472_s17  }
 0xac7   : > { %p4474_p11 = scmp.ne.s32.totalorder %s4473_s24, 0  ;;  %s2849_s18 = scalar_lea.sflag [#allocation4], %s2848_s20 }
 0xac9   : > { %p3249_p13 = pnand %p4475_p9, %p4474_p11 }
 0xacb   : > { %p3250_p1 = pneg %p3249_p13 }
 0xacd   : > { %3575 = dma.done.wait (%p3250_p1), %s2849_s18, 512  }
 0xace   : > { %3577 = vsyncadd (%p3250_p1), %s2849_s18, 4294966784  ;;  %s4476_s21 = sld [smem:[#allocation21_spill]]  ;;  %s4479_s18 = smov %s3584_s19 }
 0xacf   : > { %s4477_s29 = sld [smem:[#allocation19_spill]] }
 0xad0   : > { %s4478_s20 = sld [smem:[#allocation22_spill]] }
 0xad4   : > { %p32_p4 = scmp.ge.s32.totalorder %s4476_s21, 4  }
 0xad5   : > { %s4480_s19 = smov %s4477_s29 }
 0xad6   :  { %34 = sbr.rel (!%p32_p4) target bundleno = 16 (0x10), region = 185 }
 0xadb   :  { %2854 = vsyncpa [#allocation3], 1 }
 0xadc   :  { %2856 = vsyncpa [#allocation3 + $0x1], 1 }
 0xadd   :  { %2857 = vsyncpa [#allocation6], 1 }
 0xade   :  { %2859 = vsyncpa [#allocation6 + $0x1], 1 }
 0xadf   :  { %2860 = vsyncpa [#allocation9], 1 }
 0xae0   :  { %2861 = vsyncpa [#allocation4], 1 }
 0xae1   :  { %2863 = vsyncpa [#allocation4 + $0x1], 1 }

</bundles_post_ra>
